<compile_context>
chip_gen: v5e
topology: v5e:2x2
jax: 0.10.0
libtpu: 0.0.40
codegen_flags: <defaults>
</compile_context>

<pallas_src>
import math

import jax
import jax.numpy as jnp
from jax.experimental import pallas as pl
from jax.experimental.pallas import tpu as pltpu


def _round_up(x: int, m: int) -> int:
    return ((x + m - 1) // m) * m


def _cdiv(a: int, b: int) -> int:
    return -(-a // b)


def _default_tile_n() -> int:
    """Per-chip default row tile: smaller on v5e (1 vst slot, 128-wide MXU)."""
    try:
        kind = jax.devices()[0].device_kind.lower()
    except Exception:
        return 256
    if "v5 lite" in kind or "v5e" in kind or "v5litepod" in kind:
        return 256
    return 512


# ----------------------------------------------------------------------------
# Parameter construction (glue, plain JAX): PositionalEncoding1D table
# ----------------------------------------------------------------------------
def build_positional_encoding_table(embedding_dim: int, max_integer: int) -> jnp.ndarray:
    """Replicates PositionalEncoding1D(embedding_dim) applied to a
    (1, max_integer, embedding_dim) zero tensor, squeezed to
    (max_integer, embedding_dim).

    emb[pos, 2i]   = sin(pos * inv_freq[i])
    emb[pos, 2i+1] = cos(pos * inv_freq[i])
    inv_freq[i]    = 1 / 10000**(2i / channels),  channels = ceil(D/2)*2
    """
    channels = int(math.ceil(embedding_dim / 2) * 2)
    inv_freq = 1.0 / (
        10000.0 ** (jnp.arange(0, channels, 2, dtype=jnp.float32) / channels)
    )  # (channels//2,)
    pos = jnp.arange(max_integer, dtype=jnp.float32)  # (max_integer,)
    sin_inp = pos[:, None] * inv_freq[None, :]  # (max_integer, channels//2)
    emb = jnp.stack((jnp.sin(sin_inp), jnp.cos(sin_inp)), axis=-1).reshape(
        max_integer, channels
    )
    return emb[:, :embedding_dim].astype(jnp.float32)


# ----------------------------------------------------------------------------
# Pallas kernels: transposed embedding lookup via table_T @ one-hot_T (MXU gather)
# ----------------------------------------------------------------------------
def _gather_kernel_hilo(idx_ref, hi_ref, lo_ref, out_ref):
    # idx_ref: (1, 1, TN) int32   -- lane-major integer ids for this tile
    # hi_ref:  (D, M_pad) bf16    -- transposed table, high bf16 part (VMEM resident)
    # lo_ref:  (D, M_pad) bf16    -- transposed table, bf16 residual (f32 - hi)
    # out_ref: (D, TN)   float32  -- transposed output tile (lane-dense, TN >= 128)
    idx = idx_ref[0]                                              # (1, TN)
    m_pad = hi_ref.shape[1]
    tn = out_ref.shape[1]
    # Fused iota -> compare -> cast: only the bf16 one-hot feeds the MXU.
    rows = jax.lax.broadcasted_iota(jnp.int32, (m_pad, tn), 0)    # (M_pad, TN)
    onehot_t = (rows == idx).astype(jnp.bfloat16)                 # exact 0/1 in bf16
    acc = jnp.dot(hi_ref[...], onehot_t, preferred_element_type=jnp.float32)
    acc = acc + jnp.dot(lo_ref[...], onehot_t, preferred_element_type=jnp.float32)
    out_ref[...] = acc


def _gather_kernel_bf16(idx_ref, hi_ref, out_ref):
    # Single-pass bf16 table (values rounded to bf16, ~1e-3 relative).
    idx = idx_ref[0]
    m_pad = hi_ref.shape[1]
    tn = out_ref.shape[1]
    rows = jax.lax.broadcasted_iota(jnp.int32, (m_pad, tn), 0)
    onehot_t = (rows == idx).astype(jnp.bfloat16)
    out_ref[...] = jnp.dot(hi_ref[...], onehot_t, preferred_element_type=jnp.float32)


class IntegerEncodingPallas:
    """JAX/Pallas equivalent of the PyTorch IntegerEncoding module."""

    def __init__(
        self,
        embedding_dim: int,
        max_integer: int = 1000,
        tile_n: int | None = None,
        hi_lo_split: bool = True,
    ):
        self.embedding_dim = embedding_dim
        self.max_integer = max_integer
        self.tile_n = tile_n if tile_n is not None else _default_tile_n()
        self.hi_lo_split = hi_lo_split

        # Pad the table's row count (MXU contraction axis / one-hot sublane axis)
        # to a multiple of 256 so every MXU pass is clean (1000 -> 1024).  Padded
        # rows are zero and never selected by valid inputs (< max_integer).
        self.max_integer_padded = _round_up(max_integer, 256)
        table = build_positional_encoding_table(embedding_dim, max_integer)
        pad_rows = self.max_integer_padded - max_integer
        if pad_rows > 0:
            table = jnp.concatenate(
                [table, jnp.zeros((pad_rows, embedding_dim), jnp.float32)], axis=0
            )
        # Store the table pre-transposed as (D, M_pad) so the kernel's matmul
        # output is lane-dense (TN on lanes), and split f32 -> bf16 hi/lo so the
        # MXU operands are bf16-native on all chip generations.
        table_t = jnp.transpose(table)                        # (D, M_pad) f32
        hi = table_t.astype(jnp.bfloat16)
        lo = (table_t - hi.astype(jnp.float32)).astype(jnp.bfloat16)
        self.table_hi = hi  # (D, M_pad) bf16, frozen
        self.table_lo = lo  # (D, M_pad) bf16, frozen

    def __call__(self, integers: jnp.ndarray) -> jnp.ndarray:
        """integers: int array of shape [...] -> float32 array [..., embedding_dim]."""
        orig_shape = integers.shape
        d = self.embedding_dim
        flat = integers.reshape(-1).astype(jnp.int32)
        n = flat.shape[0]
        if n == 0:
            return jnp.zeros(orig_shape + (d,), jnp.float32)

        # Grid-first tile sizing: choose the number of steps from tile_n, then
        # the smallest multiple-of-128 tile covering n (lane-dense, unmasked
        # stores; padding waste capped at < 128 rows per step).
        grid_steps = _cdiv(n, self.tile_n)
        tn = _round_up(_cdiv(n, grid_steps), 128)
        grid_steps = _cdiv(n, tn)
        n_pad = grid_steps * tn
        if n_pad != n:
            flat = jnp.concatenate([flat, jnp.zeros((n_pad - n,), jnp.int32)])
        idx = flat.reshape(grid_steps, 1, tn)  # lane-major ids, block (1, 1, tn)

        m_pad = self.max_integer_padded
        n_tables = 2 if self.hi_lo_split else 1

        # Rough per-step VMEM budget (resident tables + one-hot build
        # intermediates + double-buffered idx/out tiles).
        est = (
            n_tables * d * m_pad * 2      # bf16 tables, VMEM resident
            + m_pad * tn * 8              # iota/compare/one-hot intermediates
            + 2 * d * tn * 4              # output tile, double buffered
            + 2 * tn * 4                  # idx tile, double buffered
        )
        compiler_kwargs = dict(dimension_semantics=("parallel",))
        if est > 24 * 1024 * 1024:
            # TODO(synk): for very large tables/tiles, switch the table to a
            # row-tiled BlockSpec on a second "arbitrary" grid axis instead of
            # only raising the scoped-VMEM limit.
            compiler_kwargs["vmem_limit_bytes"] = min(2 * est, 128 * 1024 * 1024)

        if self.hi_lo_split:
            kernel = _gather_kernel_hilo
            tables = (self.table_hi, self.table_lo)
        else:
            kernel = _gather_kernel_bf16
            tables = (self.table_hi,)
        table_specs = [
            pl.BlockSpec(memory_space=pltpu.MemorySpace.VMEM)  # untiled, resident once
            for _ in tables
        ]

        out_t = pl.pallas_call(
            kernel,
            out_shape=jax.ShapeDtypeStruct((d, n_pad), jnp.float32),
            grid_spec=pltpu.PrefetchScalarGridSpec(
                num_scalar_prefetch=0,
                grid=(grid_steps,),
                in_specs=[pl.BlockSpec((1, 1, tn), lambda i: (i, 0, 0))] + table_specs,
                out_specs=pl.BlockSpec((d, tn), lambda i: (0, i)),
            ),
            compiler_params=pltpu.CompilerParams(**compiler_kwargs),
        )(idx, *tables)

        # Undo the transpose in the wrapper (layout plumbing only).
        out = jnp.transpose(out_t[:, :n])  # (n, d)
        return out.reshape(*orig_shape, d)


# ----------------------------------------------------------------------------
# Demo / correctness check
# ----------------------------------------------------------------------------
if __name__ == "__main__":
    embedding_dim = 32
    max_integer = 1000

    module = IntegerEncodingPallas(embedding_dim, max_integer)
    ref_table = build_positional_encoding_table(embedding_dim, max_integer)

    key = jax.random.PRNGKey(0)
    k1, k2 = jax.random.split(key)

    # Small shape (matches the module's typical use: a batch of timesteps).
    integers = jax.random.randint(k1, (2, 8), 0, max_integer, dtype=jnp.int32)
    out = jax.block_until_ready(module(integers))
    ref = jnp.take(ref_table, integers, axis=0)
    assert out.shape == (2, 8, embedding_dim), out.shape
    assert out.dtype == jnp.float32
    # hi/lo bf16 split reconstructs f32 to ~4e-6 absolute on sin/cos values.
    assert jnp.allclose(out, ref, atol=2e-5, rtol=2e-5), "mismatch vs reference (small)"

    # Larger shape exercising the multi-step grid and lane-dense output tiles.
    integers2 = jax.random.randint(k2, (4, 300), 0, max_integer, dtype=jnp.int32)
    out2 = jax.block_until_ready(module(integers2))
    ref2 = jnp.take(ref_table, integers2, axis=0)
    assert out2.shape == (4, 300, embedding_dim), out2.shape
    assert jnp.allclose(out2, ref2, atol=2e-5, rtol=2e-5), "mismatch vs reference (large)"

    # NOTE: out-of-range / negative indices (and indices in [1000, 1024) that
    # land on the zero-padded rows) yield an all-zero embedding row; PyTorch
    # nn.Embedding would raise.  Inputs are assumed in [0, max_integer).
    print("KERNEL_OK")
</pallas_src>

<mosaic_0001>
module attributes {stable_mosaic.version = 11 : i64} {
  func.func @_gather_kernel_hilo(%arg0: i32, %arg1: memref<1x1x128xi32, #tpu.memory_space<vmem>>, %arg2: memref<32x1024xbf16, #tpu.memory_space<vmem>>, %arg3: memref<32x1024xbf16, #tpu.memory_space<vmem>>, %arg4: memref<32x128xf32, #tpu.memory_space<vmem>>) attributes {dimension_semantics = [#tpu.dimension_semantics<parallel>], iteration_bounds = array<i64: 1>, scalar_prefetch = 0 : i64, scratch_operands = 0 : i64, tpu.core_type = #tpu.core_type<tc>, window_params = [{transform_indices = @transform_0, window_bounds = array<i64: 1, 1, 128>}, {pipeline_mode = #tpu.pipeline_mode<synchronous>, transform_indices = @transform_1, window_bounds = array<i64: 32, 1024>}, {pipeline_mode = #tpu.pipeline_mode<synchronous>, transform_indices = @transform_2, window_bounds = array<i64: 32, 1024>}, {transform_indices = @transform_3, window_bounds = array<i64: 32, 128>}]} {
    %c0 = arith.constant 0 : index
    %c0_0 = arith.constant 0 : index
    %c0_1 = arith.constant 0 : index
    %0 = vector.load %arg1[%c0, %c0_0, %c0_1] : memref<1x1x128xi32, #tpu.memory_space<vmem>>, vector<1x1x128xi32>
    %1 = vector.shape_cast %0 : vector<1x1x128xi32> to vector<1x128xi32>
    %2 = tpu.iota {dimensions = array<i32: 0>} : vector<1024x128xi32>
    %3 = vector.broadcast %1 : vector<1x128xi32> to vector<1024x128xi32>
    %4 = arith.cmpi eq, %2, %3 : vector<1024x128xi32>
    %5 = arith.extui %4 : vector<1024x128xi1> to vector<1024x128xi32>
    %6 = arith.sitofp %5 : vector<1024x128xi32> to vector<1024x128xf32>
    %7 = arith.truncf %6 : vector<1024x128xf32> to vector<1024x128xbf16>
    %c0_2 = arith.constant 0 : index
    %c0_3 = arith.constant 0 : index
    %8 = vector.load %arg2[%c0_2, %c0_3] : memref<32x1024xbf16, #tpu.memory_space<vmem>>, vector<32x1024xbf16>
    %cst = arith.constant dense<0.000000e+00> : vector<32x128xf32>
    %9 = tpu.matmul %8, %7, %cst {dimension_numbers = #tpu.dot_dimension_numbers<[1], [0], [0], [1], [0, 0, 1, 1], [], []>} : vector<32x1024xbf16>, vector<1024x128xbf16>, vector<32x128xf32> -> vector<32x128xf32>
    %c0_4 = arith.constant 0 : index
    %c0_5 = arith.constant 0 : index
    %10 = vector.load %arg3[%c0_4, %c0_5] : memref<32x1024xbf16, #tpu.memory_space<vmem>>, vector<32x1024xbf16>
    %cst_6 = arith.constant dense<0.000000e+00> : vector<32x128xf32>
    %11 = tpu.matmul %10, %7, %cst_6 {dimension_numbers = #tpu.dot_dimension_numbers<[1], [0], [0], [1], [0, 0, 1, 1], [], []>} : vector<32x1024xbf16>, vector<1024x128xbf16>, vector<32x128xf32> -> vector<32x128xf32>
    %12 = arith.addf %9, %11 : vector<32x128xf32>
    %c0_7 = arith.constant 0 : index
    %c0_8 = arith.constant 0 : index
    %13 = vector.load %arg4[%c0_7, %c0_8] : memref<32x128xf32, #tpu.memory_space<vmem>>, vector<32x128xf32>
    tpu.vector_store %arg4[%c0_7, %c0_8], %12 {strides = array<i32>} : memref<32x128xf32, #tpu.memory_space<vmem>>, vector<32x128xf32>,
    return
  }
  func.func @transform_0(%arg0: i32) -> (i32, i32, i32) {
    %c0_i32 = arith.constant 0 : i32
    %c0_i32_0 = arith.constant 0 : i32
    %c0_i32_1 = arith.constant 0 : i32
    return %arg0, %c0_i32, %c0_i32_0 : i32, i32, i32
  }
  func.func @transform_1(%arg0: i32) -> (i32, i32) {
    %c0_i32 = arith.constant 0 : i32
    %c0_i32_0 = arith.constant 0 : i32
    %c0_i32_1 = arith.constant 0 : i32
    return %c0_i32, %c0_i32_0 : i32, i32
  }
  func.func @transform_2(%arg0: i32) -> (i32, i32) {
    %c0_i32 = arith.constant 0 : i32
    %c0_i32_0 = arith.constant 0 : i32
    %c0_i32_1 = arith.constant 0 : i32
    return %c0_i32, %c0_i32_0 : i32, i32
  }
  func.func @transform_3(%arg0: i32) -> (i32, i32) {
    %c0_i32 = arith.constant 0 : i32
    %c0_i32_0 = arith.constant 0 : i32
    return %c0_i32, %arg0 : i32, i32
  }
}

</mosaic_0001>

<bundles_post_ra>
// kernel: tpu_custom_call.1
= control target key start
LH: loop header
LB: loop body
LE: loop exit
PB: predicated region body
PF: predicated region fallthrough
CT: control target
= control target key end

     0   :  { %8 = vsyncpa [#allocation3], 0  ;;  %s3006_s0 = inlined_call_operand.hbm [shape: s32[1,1,128], index: 0, kind: input, shape index: {}]   ;;  %s3007_s1 = inlined_call_operand.hbm [shape: bf16[32,1024], index: 1, kind: input, shape index: {}]   ;;  %s3008_s2 = inlined_call_operand.hbm [shape: bf16[32,1024], index: 2, kind: input, shape index: {}]   ;;  %s3009_s3 = inlined_call_operand.hbm [shape: f32[32,128], index: 3, kind: output, shape index: {}]  }
   0x1   :  { %9 = vsyncpa [#allocation6], 0  ;;  %s26_s14 = sshll.u32 %s3007_s1, 4  ;;  %s27_s14 = int_to_ptr.hbm [resolvable:$true] %s26_s14 }
   0x2   :  { %10 = vsyncpa [#allocation4], 0  ;;  %s1815_s15 = smov [#allocation5]   ;;  %s16_s19 = sshll.u32 %s3006_s0, 4  ;;  %s17_s19 = int_to_ptr.hbm [resolvable:$true] %s16_s19 }
   0x3   :  { %s28_s16 = sshll.u32 %s1815_s15, 4  ;;  %s1816_s20 = smov 512   ;;  %s29_s16 = int_to_ptr.vmem [resolvable:$true] %s28_s16 }
   0x4   :  { %s1817_s21 = smov 32   ;;  %s1818_s22 = smov [#allocation2]  }
   0x5   :  { %34 = dma.hbm_to_vmem [thread:$0]  %s27_s14, 2048, %s29_s16, [#allocation6], %s1816_s20, %s1816_s20, %s1817_s21  }
   0x6   :  { %s18_s23 = sshll.u32 %s1818_s22, 4  ;;  %s39_s26 = sshll.u32 %s3008_s2, 4  ;;  %s19_s23 = int_to_ptr.vmem [resolvable:$true] %s18_s23  ;;  %s40_s26 = int_to_ptr.hbm [resolvable:$true] %s39_s26 }
   0x7   :  { %21 = dma.hbm_to_vmem [thread:$0]  %s17_s19, 16, %s19_s23, [#allocation3]  }
   0x8   :  { %s1819_s1 = smov [#allocation7]  }
   0x9   :  { %s41_s27 = sshll.u32 %s1819_s1, 4  ;;  %s42_s27 = int_to_ptr.vmem [resolvable:$true] %s41_s27 }
   0xa   :  { %47 = dma.hbm_to_vmem [thread:$0]  %s40_s26, 2048, %s42_s27, [#allocation6], %s1816_s20, %s1816_s20, %s1817_s21  }
   0xb   :  { %1809 = dma.done.wait [#allocation3], 16  }
   0xc   :  { %1810 = vsyncadd [#allocation3], 4294967280 }
   0xd   :  { %1811 = dma.done.wait [#allocation6], 4096  }
   0xe   :  { %1812 = vsyncadd [#allocation6], 4294963200  ;;  %v61_v0 = vlaneseq  ;;  %v1867_v14 = vld [vmem:[#allocation2] ss:$0 sm:$0xff]  ;;  %v1820_v22 = vmov 1.0|1.0  }
   0xf   :  { %v3086_v28 = vmov 0  ;;  %v3088_v33 = vmov 0  ;;  %v3092_v37 = vmov 0  ;;  %v3095_v40 = vmov 0  ;;  %v1337_v21 = vld [vmem:[#allocation7 + $0x50] sm:$0xf] }
  0x10   :  { %v1853_v1 = vshrl.u32 %v61_v0, 7  ;;  %v3099_v45 = vmov 0  ;;  %v3102_v48 = vmov 0  ;;  %v3106_v49 = vmov 0  ;;  %v1701_v23 = vld [vmem:[#allocation7 + $0x6c] sm:$0xf0] }
  0x11   :  { %v3110_v52 = vmov 0  ;;  %v3114_v57 = vmov 0  ;;  %v3117_v60 = vmov 0  ;;  %v3121_v61 = vmov 0  ;;  %v1697_v24 = vld [vmem:[#allocation7 + $0x54] sm:$0xf] }
  0x12   :  { %v76_v2 = vadd.s32 112, %v1853_v1  ;;  %v77_v3 = vadd.s32 120, %v1853_v1  ;;  %v92_v4 = vadd.s32 240, %v1853_v1  ;;  %v93_v5 = vadd.s32 248, %v1853_v1  ;;  %v1339_v25 = vld [vmem:[#allocation7 + $0x70] sm:$0xf0] }
  0x13   :  { %v108_v6 = vadd.s32 368, %v1853_v1  ;;  %v109_v7 = vadd.s32 376, %v1853_v1  ;;  %v124_v8 = vadd.s32 496, %v1853_v1  ;;  %v125_v9 = vadd.s32 504, %v1853_v1  ;;  %v1698_v36 = vld [vmem:[#allocation7 + $0x5c] sm:$0xf] }
  0x14   :  { %v74_v10 = vadd.s32 96, %v1853_v1  ;;  %v75_v11 = vadd.s32 104, %v1853_v1  ;;  %v90_v12 = vadd.s32 224, %v1853_v1  ;;  %v91_v13 = vadd.s32 232, %v1853_v1  ;;  %s1821_s0 = smov [#allocation8]   ;;  %s1145_s30 = sshll.u32 %s3009_s3, 4  ;;  %s1146_s30 = int_to_ptr.hbm [resolvable:$true] %s1145_s30 }
  0x15   :  { %v106_v15 = vadd.s32 352, %v1853_v1  ;;  %v107_v16 = vadd.s32 360, %v1853_v1  ;;  %v122_v17 = vadd.s32 480, %v1853_v1  ;;  %v123_v18 = vadd.s32 488, %v1853_v1  ;;  %s1143_s2 = sshll.u32 %s1821_s0, 4  ;;  %s1822_s4 = smov 128   ;;  %s1144_s2 = int_to_ptr.vmem [resolvable:$true] %s1143_s2 }
  0x16   :  { %v72_v19 = vadd.s32 80, %v1853_v1  ;;  %v73_v20 = vadd.s32 88, %v1853_v1  ;;  %vm205_vm0 = vcmp.eq.s32.totalorder %v76_v2, %v1867_v14  ;;  %vm206_vm1 = vcmp.eq.s32.totalorder %v77_v3, %v1867_v14  ;;  %s1823_s5 = smov 8  }
  0x17   :  { %vm221_vm2 = vcmp.eq.s32.totalorder %v92_v4, %v1867_v14  ;;  %vm222_vm3 = vcmp.eq.s32.totalorder %v93_v5, %v1867_v14  ;;  %vm1879_vm4 = vmpackc.low %vm206_vm1, %vm205_vm0  ;;  %vm237_vm5 = vcmp.eq.s32.totalorder %v108_v6, %v1867_v14  ;;  %vm238_vm6 = vcmp.eq.s32.totalorder %v109_v7, %v1867_v14 }
  0x18   :  { %vm253_vm7 = vcmp.eq.s32.totalorder %v124_v8, %v1867_v14  ;;  %vm254_vm8 = vcmp.eq.s32.totalorder %v125_v9, %v1867_v14  ;;  %1352 = vmatpush.bf16.msk.msra.mxu0 %vm1879_vm4, %v1820_v22  ;;  %vm1890_vm9 = vmpackc.low %vm222_vm3, %vm221_vm2  ;;  %vm203_vm10 = vcmp.eq.s32.totalorder %v74_v10, %v1867_v14  ;;  %vm204_vm11 = vcmp.eq.s32.totalorder %v75_v11, %v1867_v14 }
  0x19   :  { %vm219_vm12 = vcmp.eq.s32.totalorder %v90_v12, %v1867_v14  ;;  %vm220_vm13 = vcmp.eq.s32.totalorder %v91_v13, %v1867_v14  ;;  %1368 = vmatpush.bf16.msk.msra.mxu1 %vm1890_vm9, %v1820_v22  ;;  %vm1901_vm14 = vmpackc.low %vm238_vm6, %vm237_vm5  ;;  %vm235_vm15 = vcmp.eq.s32.totalorder %v106_v15, %v1867_v14  ;;  %vm236_vm0 = vcmp.eq.s32.totalorder %v107_v16, %v1867_v14  ;;  %v2164_v13 = vld [vmem:[#allocation7] sm:$0xf] }
  0x1a   :  { %vm251_vm1 = vcmp.eq.s32.totalorder %v122_v17, %v1867_v14  ;;  %vm252_vm2 = vcmp.eq.s32.totalorder %v123_v18, %v1867_v14  ;;  %1384 = vmatpush.bf16.msk.msra.mxu2 %vm1901_vm14, %v1820_v22  ;;  %vm1916_vm3 = vmpackc.low %vm254_vm8, %vm253_vm7  ;;  %vm201_vm5 = vcmp.eq.s32.totalorder %v72_v19, %v1867_v14  ;;  %v88_v26 = vadd.s32 208, %v1853_v1 }
  0x1b   :  { %v89_v27 = vadd.s32 216, %v1853_v1  ;;  %1400 = vmatpush.bf16.msk.msra.mxu3 %vm1916_vm3, %v1820_v22  ;;  %vm1931_vm7 = vmpackc.low %vm204_vm11, %vm203_vm10  ;;  %v104_v29 = vadd.s32 336, %v1853_v1  ;;  %v105_v30 = vadd.s32 344, %v1853_v1  ;;  %v120_v31 = vadd.s32 464, %v1853_v1 }
  0x1c   :  { %v3087_v28 = vsel %vm1931_vm7, 4294967295, %v3086_v28  ;;  %v121_v32 = vadd.s32 472, %v1853_v1  ;;  %1354 = vmatpush.bf16.msk.msra.mxu0 %vm1931_vm7, %v1820_v22  ;;  %vm1946_vm8 = vmpackc.low %vm220_vm13, %vm219_vm12  ;;  %v70_v34 = vadd.s32 64, %v1853_v1  ;;  %v71_v35 = vadd.s32 72, %v1853_v1 }
  0x1d   :  { %v3089_v33 = vsel %vm1946_vm8, 4294967295, %v3088_v33  ;;  %1370 = vmatpush.bf16.msk.msra.mxu1 %vm1946_vm8, %v1820_v22  ;;  %vm1961_vm12 = vmpackc.low %vm236_vm0, %vm235_vm15  ;;  %vm233_vm13 = vcmp.eq.s32.totalorder %v104_v29, %v1867_v14  ;;  %v86_v38 = vadd.s32 192, %v1853_v1  ;;  %v87_v39 = vadd.s32 200, %v1853_v1  ;;  %v2199_v29 = vld [vmem:[#allocation7 + $0x4] sm:$0xf] }
  0x1e   :  { %1386 = vmatpush.bf16.msk.msra.mxu2 %vm1961_vm12, %v1820_v22  ;;  %vm1976_vm15 = vmpackc.low %vm252_vm2, %vm251_vm1  ;;  %vm3094_vm6 = vcmp.eq.s32.totalorder %v73_v20, %v1867_v14  ;;  %v102_v41 = vadd.s32 320, %v1853_v1  ;;  %v103_v42 = vadd.s32 328, %v1853_v1  ;;  %v118_v43 = vadd.s32 448, %v1853_v1  ;;  %v2181_v20 = vld [vmem:[#allocation7 + $0x1c] sm:$0xf0] }
  0x1f   :  { %v3093_v37 = vsel %vm1976_vm15, 4294967295, %v3092_v37  ;;  %1402 = vmatpush.bf16.msk.msra.mxu3 %vm1976_vm15, %v1820_v22  ;;  %vm1991_vm1 = vmpackc.low %vm3094_vm6, %vm201_vm5  ;;  %v119_v44 = vadd.s32 456, %v1853_v1  ;;  %vm3097_vm2 = vcmp.eq.s32.totalorder %v88_v26, %v1867_v14  ;;  %vm3098_vm11 = vcmp.eq.s32.totalorder %v89_v27, %v1867_v14 }
  0x20   :  { %v3096_v40 = vsel %vm1991_vm1, 4294967295, %v3095_v40  ;;  %1356 = vmatpush.bf16.msk.msra.mxu0 %vm1991_vm1, %v1820_v22  ;;  %vm2006_vm5 = vmpackc.low %vm3098_vm11, %vm3097_vm2  ;;  %v68_v46 = vadd.s32 48, %v1853_v1  ;;  %v69_v47 = vadd.s32 56, %v1853_v1  ;;  %vm3101_vm10 = vcmp.eq.s32.totalorder %v105_v30, %v1867_v14  ;;  %v2201_v30 = vld [vmem:[#allocation7 + $0x20] sm:$0xf0] }
  0x21   :  { %v3100_v45 = vsel %vm2006_vm5, 4294967295, %v3099_v45  ;;  %1372 = vmatpush.bf16.msk.msra.mxu1 %vm2006_vm5, %v1820_v22  ;;  %vm2021_vm11 = vmpackc.low %vm3101_vm10, %vm233_vm13  ;;  %vm231_vm2 = vcmp.eq.s32.totalorder %v102_v41, %v1867_v14  ;;  %vm3104_vm5 = vcmp.eq.s32.totalorder %v120_v31, %v1867_v14  ;;  %vm3105_vm15 = vcmp.eq.s32.totalorder %v121_v32, %v1867_v14  ;;  %v2218_v32 = vld [vmem:[#allocation7 + $0x8] sm:$0xf] }
  0x22   :  { %v3103_v48 = vsel %vm2021_vm11, 4294967295, %v3102_v48  ;;  %1388 = vmatpush.bf16.msk.msra.mxu2 %vm2021_vm11, %v1820_v22  ;;  %vm2036_vm10 = vmpackc.low %vm3105_vm15, %vm3104_vm5  ;;  %v84_v50 = vadd.s32 176, %v1853_v1  ;;  %v85_v51 = vadd.s32 184, %v1853_v1  ;;  %vm3108_vm1 = vcmp.eq.s32.totalorder %v70_v34, %v1867_v14  ;;  %v2220_v34 = vld [vmem:[#allocation7 + $0x24] sm:$0xf0] }
  0x23   :  { %v3107_v49 = vsel %vm2036_vm10, 4294967295, %v3106_v49  ;;  %1404 = vmatpush.bf16.msk.msra.mxu3 %vm2036_vm10, %v1820_v22  ;;  %vm3109_vm6 = vcmp.eq.s32.totalorder %v71_v35, %v1867_v14  ;;  %v100_v53 = vadd.s32 304, %v1853_v1  ;;  %v101_v54 = vadd.s32 312, %v1853_v1 }
  0x24   :  { %vm2051_vm15 = vmpackc.low %vm3109_vm6, %vm3108_vm1  ;;  %v116_v55 = vadd.s32 432, %v1853_v1  ;;  %v117_v56 = vadd.s32 440, %v1853_v1  ;;  %vm3112_vm5 = vcmp.eq.s32.totalorder %v86_v38, %v1867_v14  ;;  %vm3113_vm0 = vcmp.eq.s32.totalorder %v87_v39, %v1867_v14 }
  0x25   :  { %v3111_v52 = vsel %vm2051_vm15, 4294967295, %v3110_v52  ;;  %1358 = vmatpush.bf16.msk.msra.mxu0 %vm2051_vm15, %v1820_v22  ;;  %vm2066_vm1 = vmpackc.low %vm3113_vm0, %vm3112_vm5  ;;  %v66_v58 = vadd.s32 32, %v1853_v1  ;;  %v67_v59 = vadd.s32 40, %v1853_v1  ;;  %vm3116_vm15 = vcmp.eq.s32.totalorder %v103_v42, %v1867_v14  ;;  %v2237_v42 = vld [vmem:[#allocation7 + $0xc] sm:$0xf] }
  0x26   :  { %v3115_v57 = vsel %vm2066_vm1, 4294967295, %v3114_v57  ;;  %1374 = vmatpush.bf16.msk.msra.mxu1 %vm2066_vm1, %v1820_v22  ;;  %vm2081_vm0 = vmpackc.low %vm3116_vm15, %vm231_vm2  ;;  %vm229_vm5 = vcmp.eq.s32.totalorder %v100_v53, %v1867_v14  ;;  %vm3119_vm1 = vcmp.eq.s32.totalorder %v118_v43, %v1867_v14  ;;  %vm3120_vm11 = vcmp.eq.s32.totalorder %v119_v44, %v1867_v14 }
  0x27   :  { %v3118_v60 = vsel %vm2081_vm0, 4294967295, %v3117_v60  ;;  %1390 = vmatpush.bf16.msk.msra.mxu2 %vm2081_vm0, %v1820_v22  ;;  %vm2096_vm2 = vmpackc.low %vm3120_vm11, %vm3119_vm1  ;;  %v82_v62 = vadd.s32 160, %v1853_v1  ;;  %v83_v63 = vadd.s32 168, %v1853_v1  ;;  %vm3123_vm10 = vcmp.eq.s32.totalorder %v68_v46, %v1867_v14 }
  0x28   :  { %v3122_v61 = vsel %vm2096_vm2, 4294967295, %v3121_v61  ;;  %1406 = vmatpush.bf16.msk.msra.mxu3 %vm2096_vm2, %v1820_v22  ;;  %vm3124_vm6 = vcmp.eq.s32.totalorder %v69_v47, %v1867_v14  ;;  %v3125_v0 = vmov 0  ;;  %v98_v2 = vadd.s32 288, %v1853_v1 }
  0x29   :  { %vm2111_vm11 = vmpackc.low %vm3124_vm6, %vm3123_vm10  ;;  %v99_v3 = vadd.s32 296, %v1853_v1  ;;  %v114_v4 = vadd.s32 416, %v1853_v1  ;;  %v115_v5 = vadd.s32 424, %v1853_v1  ;;  %vm3127_vm1 = vcmp.eq.s32.totalorder %v84_v50, %v1867_v14 }
  0x2a   :  { %v3126_v0 = vsel %vm2111_vm11, 4294967295, %v3125_v0  ;;  %1360 = vmatpush.bf16.msk.msra.mxu0 %vm2111_vm11, %v1820_v22  ;;  %vm3128_vm13 = vcmp.eq.s32.totalorder %v85_v51, %v1867_v14  ;;  %v3129_v6 = vmov 0  ;;  %v64_v7 = vadd.s32 16, %v1853_v1  ;;  %v2255_v51 = vld [vmem:[#allocation7 + $0x28] sm:$0xf0] }
  0x2b   :  { %vm2126_vm10 = vmpackc.low %vm3128_vm13, %vm3127_vm1  ;;  %v65_v8 = vadd.s32 24, %v1853_v1  ;;  %vm3131_vm11 = vcmp.eq.s32.totalorder %v101_v54, %v1867_v14  ;;  %v3132_v9 = vmov 0  ;;  %vm3135_vm0 = vcmp.eq.s32.totalorder %v117_v56, %v1867_v14 }
  0x2c   :  { %v3130_v6 = vsel %vm2126_vm10, 4294967295, %v3129_v6  ;;  %1376 = vmatpush.bf16.msk.msra.mxu1 %vm2126_vm10, %v1820_v22  ;;  %vm2141_vm13 = vmpackc.low %vm3131_vm11, %vm229_vm5  ;;  %vm3134_vm10 = vcmp.eq.s32.totalorder %v116_v55, %v1867_v14  ;;  %v3136_v10 = vmov 0  ;;  %v80_v11 = vadd.s32 144, %v1853_v1 }
  0x2d   :  { %v3133_v9 = vsel %vm2141_vm13, 4294967295, %v3132_v9  ;;  %1392 = vmatpush.bf16.msk.msra.mxu2 %vm2141_vm13, %v1820_v22  ;;  %vm2156_vm5 = vmpackc.low %vm3135_vm0, %vm3134_vm10  ;;  %v81_v12 = vadd.s32 152, %v1853_v1  ;;  %vm3138_vm2 = vcmp.eq.s32.totalorder %v66_v58, %v1867_v14  ;;  %vm3139_vm0 = vcmp.eq.s32.totalorder %v67_v59, %v1867_v14 }
  0x2e   :  { %v3137_v10 = vsel %vm2156_vm5, 4294967295, %v3136_v10  ;;  %1408 = vmatpush.bf16.msk.msra.mxu3 %vm2156_vm5, %v1820_v22  ;;  %vm2173_vm10 = vmpackc.low %vm3139_vm0, %vm3138_vm2  ;;  %v3140_v15 = vmov 0  ;;  %v96_v16 = vadd.s32 272, %v1853_v1  ;;  %v97_v17 = vadd.s32 280, %v1853_v1 }
  0x2f   :  { %v3141_v15 = vsel %vm2173_vm10, 4294967295, %v3140_v15  ;;  %v112_v18 = vadd.s32 400, %v1853_v1  ;;  %v113_v19 = vadd.s32 408, %v1853_v1  ;;  %1362 = vmatpush.bf16.msk.msra.mxu0 %vm2173_vm10, %v1820_v22  ;;  %vm3142_vm15 = vcmp.eq.s32.totalorder %v82_v62, %v1867_v14 }
  0x30   :  { %vm3143_vm2 = vcmp.eq.s32.totalorder %v83_v63, %v1867_v14  ;;  %v3144_v26 = vmov 0  ;;  %v63_v27 = vadd.s32 8, %v1853_v1  ;;  %v3148_v31 = vmov 0 }
  0x31   :  { %vm2190_vm0 = vmpackc.low %vm3143_vm2, %vm3142_vm15  ;;  %vm3146_vm15 = vcmp.eq.s32.totalorder %v98_v2, %v1867_v14  ;;  %vm3147_vm2 = vcmp.eq.s32.totalorder %v99_v3, %v1867_v14  ;;  %v3152_v35 = vmov 0  ;;  %v78_v38 = vadd.s32 128, %v1853_v1 }
  0x32   :  { %v3145_v26 = vsel %vm2190_vm0, 4294967295, %v3144_v26  ;;  %1378 = vmatpush.bf16.msk.msra.mxu1 %vm2190_vm0, %v1820_v22  ;;  %vm2210_vm11 = vmpackc.low %vm3147_vm2, %vm3146_vm15  ;;  %vm3150_vm15 = vcmp.eq.s32.totalorder %v114_v4, %v1867_v14  ;;  %vm3151_vm2 = vcmp.eq.s32.totalorder %v115_v5, %v1867_v14  ;;  %v79_v39 = vadd.s32 136, %v1853_v1 }
  0x33   :  { %v3149_v31 = vsel %vm2210_vm11, 4294967295, %v3148_v31  ;;  %1394 = vmatpush.bf16.msk.msra.mxu2 %vm2210_vm11, %v1820_v22  ;;  %vm2229_vm0 = vmpackc.low %vm3151_vm2, %vm3150_vm15  ;;  %v94_v41 = vadd.s32 256, %v1853_v1  ;;  %vm3154_vm5 = vcmp.eq.s32.totalorder %v64_v7, %v1867_v14  ;;  %vm3155_vm15 = vcmp.eq.s32.totalorder %v65_v8, %v1867_v14 }
  0x34   :  { %v3153_v35 = vsel %vm2229_vm0, 4294967295, %v3152_v35  ;;  %1410 = vmatpush.bf16.msk.msra.mxu3 %vm2229_vm0, %v1820_v22  ;;  %vm2246_vm2 = vmpackc.low %vm3155_vm15, %vm3154_vm5  ;;  %v3156_v43 = vmov 0  ;;  %v95_v44 = vadd.s32 264, %v1853_v1  ;;  %v110_v46 = vadd.s32 384, %v1853_v1 }
  0x35   :  { %v3157_v43 = vsel %vm2246_vm2, 4294967295, %v3156_v43  ;;  %v111_v47 = vadd.s32 392, %v1853_v1  ;;  %v1290_v50 = vor.u32 %v2181_v20, %v2164_v13  ;;  %1364 = vmatpush.bf16.msk.msra.mxu0 %vm2246_vm2, %v1820_v22  ;;  %vm3158_vm5 = vcmp.eq.s32.totalorder %v80_v11, %v1867_v14 }
  0x36   :  { %vm3159_vm15 = vcmp.eq.s32.totalorder %v81_v12, %v1867_v14  ;;  %v3160_v53 = vmov 0  ;;  %v1294_v54 = vor.u32 %v2199_v29, %v2201_v30  ;;  %vm3162_vm2 = vcmp.eq.s32.totalorder %v96_v16, %v1867_v14 }
  0x37   :  { %vm2264_vm10 = vmpackc.low %vm3159_vm15, %vm3158_vm5  ;;  %vm3163_vm5 = vcmp.eq.s32.totalorder %v97_v17, %v1867_v14  ;;  %v3164_v55 = vmov 0  ;;  %v1298_v56 = vor.u32 %v2220_v34, %v2218_v32  ;;  %v3168_v58 = vmov 0 }
  0x38   :  { %v3161_v53 = vsel %vm2264_vm10, 4294967295, %v3160_v53  ;;  %1380 = vmatpush.bf16.msk.msra.mxu1 %vm2264_vm10, %v1820_v22  ;;  %vm2280_vm15 = vmpackc.low %vm3163_vm5, %vm3162_vm2  ;;  %vm3166_vm10 = vcmp.eq.s32.totalorder %v112_v18, %v1867_v14  ;;  %vm3167_vm2 = vcmp.eq.s32.totalorder %v113_v19, %v1867_v14  ;;  %v1302_v59 = vor.u32 %v2237_v42, %v2255_v51 }
  0x39   :  { %v3165_v55 = vsel %vm2280_vm15, 4294967295, %v3164_v55  ;;  %1396 = vmatpush.bf16.msk.msra.mxu2 %vm2280_vm15, %v1820_v22  ;;  %vm2296_vm5 = vmpackc.low %vm3167_vm2, %vm3166_vm10  ;;  %v172_v62 = vadd.s32 880, %v1853_v1  ;;  %v173_v63 = vadd.s32 888, %v1853_v1  ;;  %v140_v2 = vadd.s32 624, %v1853_v1 }
  0x3a   :  { %v3169_v58 = vsel %vm2296_vm5, 4294967295, %v3168_v58  ;;  %1412 = vmatpush.bf16.msk.msra.mxu3 %vm2296_vm5, %v1820_v22  ;;  %vm3170_vm0 = vcmp.eq.s32.totalorder %v1853_v1, %v1867_v14  ;;  %vm3171_vm10 = vcmp.eq.s32.totalorder %v63_v27, %v1867_v14  ;;  %v3172_v3 = vmov 0 }
  0x3b   :  { %vm2313_vm2 = vmpackc.low %vm3171_vm10, %vm3170_vm0  ;;  %v141_v4 = vadd.s32 632, %v1853_v1  ;;  %v156_v5 = vadd.s32 752, %v1853_v1  ;;  %v157_v7 = vadd.s32 760, %v1853_v1  ;;  %v188_v8 = vadd.s32 1008, %v1853_v1 }
  0x3c   :  { %v3173_v3 = vsel %vm2313_vm2, 4294967295, %v3172_v3  ;;  %1366 = vmatpush.bf16.msk.msra.mxu0 %vm2313_vm2, %v1820_v22  ;;  %vm3174_vm6 = vcmp.eq.s32.totalorder %v78_v38, %v1867_v14  ;;  %vm3175_vm1 = vcmp.eq.s32.totalorder %v79_v39, %v1867_v14  ;;  %v3176_v11 = vmov 0 }
  0x3d   :  { %vm2328_vm0 = vmpackc.low %vm3175_vm1, %vm3174_vm6  ;;  %v189_v12 = vadd.s32 1016, %v1853_v1  ;;  %vm3178_vm2 = vcmp.eq.s32.totalorder %v94_v41, %v1867_v14  ;;  %vm3179_vm11 = vcmp.eq.s32.totalorder %v95_v44, %v1867_v14  ;;  %v3180_v13 = vmov 0 }
  0x3e   :  { %v3177_v11 = vsel %vm2328_vm0, 4294967295, %v3176_v11  ;;  %1382 = vmatpush.bf16.msk.msra.mxu1 %vm2328_vm0, %v1820_v22  ;;  %vm2343_vm6 = vmpackc.low %vm3179_vm11, %vm3178_vm2  ;;  %vm270_vm1 = vcmp.eq.s32.totalorder %v141_v4, %v1867_v14  ;;  %vm3182_vm0 = vcmp.eq.s32.totalorder %v110_v46, %v1867_v14  ;;  %vm3183_vm13 = vcmp.eq.s32.totalorder %v111_v47, %v1867_v14 }
  0x3f   :  { %v3181_v13 = vsel %vm2343_vm6, 4294967295, %v3180_v13  ;;  %1398 = vmatpush.bf16.msk.msra.mxu2 %vm2343_vm6, %v1820_v22  ;;  %vm2358_vm11 = vmpackc.low %vm3183_vm13, %vm3182_vm0  ;;  %v3184_v16 = vmov 0  ;;  %v170_v17 = vadd.s32 864, %v1853_v1  ;;  %v171_v18 = vadd.s32 872, %v1853_v1  ;;  %759 = vmatmul.bf16.vlgmr.msra.gmra.mxu0 %v1290_v50 }
  0x40   :  { %v3185_v16 = vsel %vm2358_vm11, 4294967295, %v3184_v16  ;;  %v138_v19 = vadd.s32 608, %v1853_v1  ;;  %1414 = vmatpush.bf16.msk.msra.mxu3 %vm2358_vm11, %v1820_v22  ;;  %vm3186_vm10 = vcmp.eq.s32.totalorder %v172_v62, %v1867_v14  ;;  %vm3187_vm13 = vcmp.eq.s32.totalorder %v173_v63, %v1867_v14  ;;  %v2456_v63 = vld [vmem:[#allocation7 + $0x40] sm:$0xf] }
  0x41   :  { %vm2373_vm0 = vmpackc.low %vm3187_vm13, %vm3186_vm10  ;;  %v3188_v20 = vmov 0  ;;  %v139_v27 = vadd.s32 616, %v1853_v1  ;;  %v154_v29 = vadd.s32 736, %v1853_v1  ;;  %v155_v30 = vadd.s32 744, %v1853_v1  ;;  %778 = vmatmul.bf16.vlgmr.msra.gmra.mxu1 %v1294_v54 }
  0x42   :  { %v3189_v20 = vsel %vm2373_vm0, 4294967295, %v3188_v20  ;;  %v186_v32 = vadd.s32 992, %v1853_v1  ;;  %vm3190_vm2 = vcmp.eq.s32.totalorder %v140_v2, %v1867_v14  ;;  %v3191_v34 = vmov 0  ;;  %797 = vmatmul.bf16.vlgmr.msra.gmra.mxu2 %v1298_v56 }
  0x43   :  { %1448 = vmatpush.bf16.msk.msrb.mxu2 %vm2373_vm0, %v1820_v22  ;;  %vm2388_vm10 = vmpackc.low %vm270_vm1, %vm3190_vm2  ;;  %v187_v38 = vadd.s32 1000, %v1853_v1  ;;  %vm3193_vm0 = vcmp.eq.s32.totalorder %v156_v5, %v1867_v14  ;;  %vm3194_vm1 = vcmp.eq.s32.totalorder %v157_v7, %v1867_v14  ;;  %v3195_v39 = vmov 0  ;;  %816 = vmatmul.bf16.vlgmr.msra.gmra.mxu3 %v1302_v59  ;;  %v1699_v5 = vld [vmem:[#allocation7 + $0x5c] sm:$0xf0]  ;;  %v2473_v7 = vld [vmem:[#allocation7 + $0x44] sm:$0xf] }
  0x44   :  { %v3192_v34 = vsel %vm2388_vm10, 4294967295, %v3191_v34  ;;  %1416 = vmatpush.bf16.msk.msrb.mxu0 %vm2388_vm10, %v1820_v22  ;;  %vm2403_vm2 = vmpackc.low %vm3194_vm1, %vm3193_vm0  ;;  %v168_v41 = vadd.s32 848, %v1853_v1  ;;  %vm3197_vm10 = vcmp.eq.s32.totalorder %v188_v8, %v1867_v14  ;;  %vm3198_vm0 = vcmp.eq.s32.totalorder %v189_v12, %v1867_v14 }
  0x45   :  { %v3196_v39 = vsel %vm2403_vm2, 4294967295, %v3195_v39  ;;  %1432 = vmatpush.bf16.msk.msrb.mxu1 %vm2403_vm2, %v1820_v22  ;;  %vm2418_vm1 = vmpackc.low %vm3198_vm0, %vm3197_vm10  ;;  %v3199_v42 = vmov 0  ;;  %v169_v44 = vadd.s32 856, %v1853_v1  ;;  %v136_v46 = vadd.s32 592, %v1853_v1 }
  0x46   :  { %v3200_v42 = vsel %vm2418_vm1, 4294967295, %v3199_v42  ;;  %1464 = vmatpush.bf16.msk.msrb.mxu3 %vm2418_vm1, %v1820_v22  ;;  %vm3201_vm5 = vcmp.eq.s32.totalorder %v170_v17, %v1867_v14  ;;  %vm3202_vm2 = vcmp.eq.s32.totalorder %v171_v18, %v1867_v14  ;;  %v3203_v47 = vmov 0  ;;  %v1323_v18 = vld [vmem:[#allocation7 + $0x60] sm:$0xf0] }
  0x47   :  { %vm2433_vm10 = vmpackc.low %vm3202_vm2, %vm3201_vm5  ;;  %v137_v50 = vadd.s32 600, %v1853_v1  ;;  %v152_v51 = vadd.s32 720, %v1853_v1  ;;  %v153_v54 = vadd.s32 728, %v1853_v1  ;;  %vm3205_vm15 = vcmp.eq.s32.totalorder %v138_v19, %v1867_v14  ;;  %v2490_v19 = vld [vmem:[#allocation7 + $0x48] sm:$0xf] }
  0x48   :  { %v3204_v47 = vsel %vm2433_vm10, 4294967295, %v3203_v47  ;;  %1450 = vmatpush.bf16.msk.msrb.mxu2 %vm2433_vm10, %v1820_v22  ;;  %vm3206_vm13 = vcmp.eq.s32.totalorder %v139_v27, %v1867_v14  ;;  %v3207_v56 = vmov 0  ;;  %v184_v59 = vadd.s32 976, %v1853_v1 }
  0x49   :  { %vm2448_vm5 = vmpackc.low %vm3206_vm13, %vm3205_vm15  ;;  %v185_v62 = vadd.s32 984, %v1853_v1  ;;  %vm3210_vm10 = vcmp.eq.s32.totalorder %v154_v29, %v1867_v14  ;;  %vm3211_vm15 = vcmp.eq.s32.totalorder %v155_v30, %v1867_v14  ;;  %v3212_v2 = vmov 0 }
  0x4a   :  { %v3208_v56 = vsel %vm2448_vm5, 4294967295, %v3207_v56  ;;  %1418 = vmatpush.bf16.msk.msrb.mxu0 %vm2448_vm5, %v1820_v22  ;;  %vm2465_vm13 = vmpackc.low %vm3211_vm15, %vm3210_vm10  ;;  %v166_v4 = vadd.s32 832, %v1853_v1  ;;  %vm3215_vm10 = vcmp.eq.s32.totalorder %v186_v32, %v1867_v14  ;;  %vm3216_vm15 = vcmp.eq.s32.totalorder %v187_v38, %v1867_v14  ;;  %v1700_v38 = vld [vmem:[#allocation7 + $0x64] sm:$0xf0] }
  0x4b   :  { %3209 = vst [vmem:[#allocation12_spill] sm:$0xff] %v3208_v56  ;;  %v3213_v2 = vsel %vm2465_vm13, 4294967295, %v3212_v2  ;;  %1434 = vmatpush.bf16.msk.msrb.mxu1 %vm2465_vm13, %v1820_v22  ;;  %vm2482_vm5 = vmpackc.low %vm3216_vm15, %vm3215_vm10  ;;  %v3217_v8 = vmov 0  ;;  %v167_v12 = vadd.s32 840, %v1853_v1  ;;  %v134_v17 = vadd.s32 576, %v1853_v1 }
  0x4c   :  { %3214 = vst [vmem:[#allocation13_spill] sm:$0xff] %v3213_v2  ;;  %v3218_v8 = vsel %vm2482_vm5, 4294967295, %v3217_v8  ;;  %1466 = vmatpush.bf16.msk.msrb.mxu3 %vm2482_vm5, %v1820_v22  ;;  %vm3220_vm10 = vcmp.eq.s32.totalorder %v168_v41, %v1867_v14  ;;  %vm3221_vm15 = vcmp.eq.s32.totalorder %v169_v44, %v1867_v14  ;;  %v3222_v27 = vmov 0  ;;  %v1696_v2 = vld [vmem:[#allocation7 + $0x4c] sm:$0xf] }
  0x4d   :  { %3219 = vst [vmem:[#allocation14_spill] sm:$0xff] %v3218_v8  ;;  %vm2499_vm0 = vmpackc.low %vm3221_vm15, %vm3220_vm10  ;;  %v135_v29 = vadd.s32 584, %v1853_v1  ;;  %v150_v30 = vadd.s32 704, %v1853_v1  ;;  %v151_v32 = vadd.s32 712, %v1853_v1  ;;  %vm3224_vm2 = vcmp.eq.s32.totalorder %v136_v46, %v1867_v14  ;;  %v1331_v56 = vld [vmem:[#allocation7 + $0x68] sm:$0xf0] }
  0x4e   :  { %v3223_v27 = vsel %vm2499_vm0, 4294967295, %v3222_v27  ;;  %1452 = vmatpush.bf16.msk.msrb.mxu2 %vm2499_vm0, %v1820_v22  ;;  %vm3225_vm10 = vcmp.eq.s32.totalorder %v137_v50, %v1867_v14  ;;  %v3226_v41 = vmov 0  ;;  %v182_v44 = vadd.s32 960, %v1853_v1 }
  0x4f   :  { %vm2514_vm15 = vmpackc.low %vm3225_vm10, %vm3224_vm2  ;;  %v183_v8 = vadd.s32 968, %v1853_v1  ;;  %vm3228_vm0 = vcmp.eq.s32.totalorder %v152_v51, %v1867_v14  ;;  %vm3229_vm2 = vcmp.eq.s32.totalorder %v153_v54, %v1867_v14  ;;  %v3230_v46 = vmov 0 }
  0x50   :  { %v3227_v41 = vsel %vm2514_vm15, 4294967295, %v3226_v41  ;;  %1420 = vmatpush.bf16.msk.msrb.mxu0 %vm2514_vm15, %v1820_v22  ;;  %vm2529_vm10 = vmpackc.low %vm3229_vm2, %vm3228_vm0  ;;  %v1322_v50 = vor.u32 %v1699_v5, %v2456_v63  ;;  %vm3233_vm15 = vcmp.eq.s32.totalorder %v184_v59, %v1867_v14  ;;  %vm3234_vm11 = vcmp.eq.s32.totalorder %v185_v62, %v1867_v14 }
  0x51   :  { %v3231_v46 = vsel %vm2529_vm10, 4294967295, %v3230_v46  ;;  %1436 = vmatpush.bf16.msk.msrb.mxu1 %vm2529_vm10, %v1820_v22  ;;  %vm2544_vm0 = vmpackc.low %vm3234_vm11, %vm3233_vm15  ;;  %v3235_v51 = vmov 0  ;;  %v1326_v54 = vor.u32 %v2473_v7, %v1323_v18  ;;  %v1330_v63 = vor.u32 %v1700_v38, %v2490_v19 }
  0x52   :  { %3232 = vst [vmem:[#allocation15_spill] sm:$0xff] %v3231_v46  ;;  %v3236_v51 = vsel %vm2544_vm0, 4294967295, %v3235_v51  ;;  %1468 = vmatpush.bf16.msk.msrb.mxu3 %vm2544_vm0, %v1820_v22  ;;  %vm3237_vm13 = vcmp.eq.s32.totalorder %v166_v4, %v1867_v14  ;;  %vm3238_vm5 = vcmp.eq.s32.totalorder %v167_v12, %v1867_v14  ;;  %v3239_v59 = vmov 0  ;;  %764 = vmatmul.bf16.gmra.mxu0 %v1322_v50 }
  0x53   :  { %vm2559_vm11 = vmpackc.low %vm3238_vm5, %vm3237_vm13  ;;  %v1334_v62 = vor.u32 %v1696_v2, %v1331_v56  ;;  %v164_v5 = vadd.s32 816, %v1853_v1  ;;  %v165_v46 = vadd.s32 824, %v1853_v1  ;;  %v132_v7 = vadd.s32 560, %v1853_v1  ;;  %783 = vmatmul.bf16.gmra.mxu1 %v1326_v54  ;;  %802 = vmatmul.bf16.gmra.mxu2 %v1330_v63 }
  0x54   :  { %v3240_v59 = vsel %vm2559_vm11, 4294967295, %v3239_v59  ;;  %1454 = vmatpush.bf16.msk.msrb.mxu2 %vm2559_vm11, %v1820_v22  ;;  %vm3241_vm15 = vcmp.eq.s32.totalorder %v134_v17, %v1867_v14  ;;  %vm3242_vm1 = vcmp.eq.s32.totalorder %v135_v29, %v1867_v14  ;;  %v3243_v4 = vmov 0 }
  0x55   :  { %vm2573_vm2 = vmpackc.low %vm3242_vm1, %vm3241_vm15  ;;  %v133_v56 = vadd.s32 568, %v1853_v1  ;;  %v148_v2 = vadd.s32 688, %v1853_v1  ;;  %v149_v12 = vadd.s32 696, %v1853_v1  ;;  %v180_v18 = vadd.s32 944, %v1853_v1  ;;  %821 = vmatmul.bf16.gmra.mxu3 %v1334_v62 }
  0x56   :  { %v3244_v4 = vsel %vm2573_vm2, 4294967295, %v3243_v4  ;;  %1422 = vmatpush.bf16.msk.msrb.mxu0 %vm2573_vm2, %v1820_v22  ;;  %vm3245_vm5 = vcmp.eq.s32.totalorder %v150_v30, %v1867_v14  ;;  %vm3246_vm13 = vcmp.eq.s32.totalorder %v151_v32, %v1867_v14  ;;  %v3247_v17 = vmov 0 }
  0x57   :  { %vm2588_vm1 = vmpackc.low %vm3246_vm13, %vm3245_vm5  ;;  %vm293_vm15 = vcmp.eq.s32.totalorder %v164_v5, %v1867_v14  ;;  %vm294_vm11 = vcmp.eq.s32.totalorder %v165_v46, %v1867_v14  ;;  %v181_v19 = vadd.s32 952, %v1853_v1  ;;  %vm3249_vm2 = vcmp.eq.s32.totalorder %v182_v44, %v1867_v14 }
  0x58   :  { %v3248_v17 = vsel %vm2588_vm1, 4294967295, %v3247_v17  ;;  %1438 = vmatpush.bf16.msk.msrb.mxu1 %vm2588_vm1, %v1820_v22  ;;  %vm3250_vm10 = vcmp.eq.s32.totalorder %v183_v8, %v1867_v14  ;;  %v3251_v29 = vmov 0  ;;  %vm262_vm13 = vcmp.eq.s32.totalorder %v133_v56, %v1867_v14  ;;  %vm2614_vm1 = vmpackc.low %vm294_vm11, %vm293_vm15 }
  0x59   :  { %vm2603_vm5 = vmpackc.low %vm3250_vm10, %vm3249_vm2  ;;  %vm277_vm6 = vcmp.eq.s32.totalorder %v148_v2, %v1867_v14  ;;  %vm278_vm0 = vcmp.eq.s32.totalorder %v149_v12, %v1867_v14  ;;  %v3254_v30 = vmov 0  ;;  %v162_v8 = vadd.s32 800, %v1853_v1  ;;  %1456 = vmatpush.bf16.msk.msrb.mxu2 %vm2614_vm1, %v1820_v22 }
  0x5a   :  { %v3252_v29 = vsel %vm2603_vm5, 4294967295, %v3251_v29  ;;  %1470 = vmatpush.bf16.msk.msrb.mxu3 %vm2603_vm5, %v1820_v22  ;;  %v3255_v30 = vsel %vm2614_vm1, 4294967295, %v3254_v30  ;;  %v163_v32 = vadd.s32 808, %v1853_v1  ;;  %v130_v38 = vadd.s32 544, %v1853_v1  ;;  %vm2642_vm11 = vmpackc.low %vm278_vm0, %vm277_vm6 }
  0x5b   :  { %3253 = vst [vmem:[#allocation16_spill] sm:$0xff] %v3252_v29  ;;  %vm3257_vm2 = vcmp.eq.s32.totalorder %v132_v7, %v1867_v14  ;;  %v3258_v44 = vmov 0  ;;  %v131_v46 = vadd.s32 552, %v1853_v1  ;;  %v146_v50 = vadd.s32 672, %v1853_v1  ;;  %v1307_v29 = vld [vmem:[#allocation7 + $0x30] sm:$0xf0] }
  0x5c   :  { %3256 = vst [vmem:[#allocation17_spill] sm:$0xff] %v3255_v30  ;;  %vm2627_vm8 = vmpackc.low %vm262_vm13, %vm3257_vm2  ;;  %v147_v5 = vadd.s32 680, %v1853_v1  ;;  %v178_v56 = vadd.s32 928, %v1853_v1  ;;  %v3261_v54 = vmov 0  ;;  %vm291_vm15 = vcmp.eq.s32.totalorder %v162_v8, %v1867_v14  ;;  %1440 = vmatpush.bf16.msk.msrb.mxu1 %vm2642_vm11, %v1820_v22  ;;  %v1689_v30 = vld [vmem:[#allocation7 + $0x14] sm:$0xf] }
  0x5d   :  { %v3259_v44 = vsel %vm2627_vm8, 4294967295, %v3258_v44  ;;  %1424 = vmatpush.bf16.msk.msrb.mxu0 %vm2627_vm8, %v1820_v22  ;;  %v3262_v54 = vsel %vm2642_vm11, 4294967295, %v3261_v54  ;;  %vm292_vm13 = vcmp.eq.s32.totalorder %v163_v32, %v1867_v14  ;;  %v179_v63 = vadd.s32 936, %v1853_v1 }
  0x5e   :  { %3260 = vst [vmem:[#allocation18_spill] sm:$0xff] %v3259_v44  ;;  %vm3264_vm10 = vcmp.eq.s32.totalorder %v180_v18, %v1867_v14  ;;  %vm3265_vm6 = vcmp.eq.s32.totalorder %v181_v19, %v1867_v14  ;;  %v3266_v7 = vmov 0  ;;  %vm260_vm8 = vcmp.eq.s32.totalorder %v131_v46, %v1867_v14  ;;  %vm2668_vm11 = vmpackc.low %vm292_vm13, %vm291_vm15 }
  0x5f   :  { %3263 = vst [vmem:[#allocation19_spill] sm:$0xff] %v3262_v54  ;;  %vm2657_vm0 = vmpackc.low %vm3265_vm6, %vm3264_vm10  ;;  %v160_v62 = vadd.s32 784, %v1853_v1  ;;  %v3269_v2 = vmov 0  ;;  %vm307_vm10 = vcmp.eq.s32.totalorder %v178_v56, %v1867_v14  ;;  %v161_v12 = vadd.s32 792, %v1853_v1  ;;  %1458 = vmatpush.bf16.msk.msrb.mxu2 %vm2668_vm11, %v1820_v22  ;;  %v1693_v54 = vld [vmem:[#allocation7 + $0x2c] sm:$0xf0] }
  0x60   :  { %v3267_v7 = vsel %vm2657_vm0, 4294967295, %v3266_v7  ;;  %1472 = vmatpush.bf16.msk.msrb.mxu3 %vm2657_vm0, %v1820_v22  ;;  %v3270_v2 = vsel %vm2668_vm11, 4294967295, %v3269_v2  ;;  %v128_v18 = vadd.s32 528, %v1853_v1  ;;  %vm3272_vm2 = vcmp.eq.s32.totalorder %v130_v38, %v1867_v14 }
  0x61   :  { %3268 = vst [vmem:[#allocation20_spill] sm:$0xff] %v3267_v7  ;;  %vm2681_vm1 = vmpackc.low %vm260_vm8, %vm3272_vm2  ;;  %v3273_v19 = vmov 0  ;;  %v129_v8 = vadd.s32 536, %v1853_v1  ;;  %v144_v32 = vadd.s32 656, %v1853_v1  ;;  %v145_v46 = vadd.s32 664, %v1853_v1 }
  0x62   :  { %3271 = vst [vmem:[#allocation21_spill] sm:$0xff] %v3270_v2  ;;  %v3274_v19 = vsel %vm2681_vm1, 4294967295, %v3273_v19  ;;  %1426 = vmatpush.bf16.msk.msrb.mxu0 %vm2681_vm1, %v1820_v22  ;;  %vm3276_vm13 = vcmp.eq.s32.totalorder %v146_v50, %v1867_v14  ;;  %vm3277_vm6 = vcmp.eq.s32.totalorder %v147_v5, %v1867_v14  ;;  %v3278_v38 = vmov 0 }
  0x63   :  { %3275 = vst [vmem:[#allocation22_spill] sm:$0xff] %v3274_v19  ;;  %vm2696_vm8 = vmpackc.low %vm3277_vm6, %vm3276_vm13  ;;  %vm290_vm2 = vcmp.eq.s32.totalorder %v161_v12, %v1867_v14  ;;  %v176_v2 = vadd.s32 912, %v1853_v1  ;;  %v177_v7 = vadd.s32 920, %v1853_v1  ;;  %vm3281_vm1 = vcmp.eq.s32.totalorder %v179_v63, %v1867_v14 }
  0x64   :  { %v3279_v38 = vsel %vm2696_vm8, 4294967295, %v3278_v38  ;;  %1442 = vmatpush.bf16.msk.msrb.mxu1 %vm2696_vm8, %v1820_v22  ;;  %vm2711_vm6 = vmpackc.low %vm3281_vm1, %vm307_vm10  ;;  %v3282_v50 = vmov 0  ;;  %vm258_vm13 = vcmp.eq.s32.totalorder %v129_v8, %v1867_v14  ;;  %v158_v5 = vadd.s32 768, %v1853_v1  ;;  %v1305_v8 = vld [vmem:[#allocation7 + $0x10] sm:$0xf] }
  0x65   :  { %3280 = vst [vmem:[#allocation23_spill] sm:$0xff] %v3279_v38  ;;  %v3283_v50 = vsel %vm2711_vm6, 4294967295, %v3282_v50  ;;  %1474 = vmatpush.bf16.msk.msrb.mxu3 %vm2711_vm6, %v1820_v22  ;;  %vm3285_vm8 = vcmp.eq.s32.totalorder %v160_v62, %v1867_v14  ;;  %v3286_v56 = vmov 0  ;;  %vm305_vm1 = vcmp.eq.s32.totalorder %v176_v2, %v1867_v14  ;;  %v1690_v2 = vld [vmem:[#allocation7 + $0x1c] sm:$0xf] }
  0x66   :  { %3284 = vst [vmem:[#allocation24_spill] sm:$0xff] %v3283_v50  ;;  %vm2724_vm0 = vmpackc.low %vm290_vm2, %vm3285_vm8  ;;  %v159_v63 = vadd.s32 776, %v1853_v1  ;;  %v126_v12 = vadd.s32 512, %v1853_v1  ;;  %vm3289_vm11 = vcmp.eq.s32.totalorder %v128_v18, %v1867_v14  ;;  %v3290_v62 = vmov 0 }
  0x67   :  { %v3287_v56 = vsel %vm2724_vm0, 4294967295, %v3286_v56  ;;  %1460 = vmatpush.bf16.msk.msrb.mxu2 %vm2724_vm0, %v1820_v22  ;;  %vm2737_vm15 = vmpackc.low %vm258_vm13, %vm3289_vm11  ;;  %v127_v50 = vadd.s32 520, %v1853_v1  ;;  %v142_v38 = vadd.s32 640, %v1853_v1  ;;  %v143_v19 = vadd.s32 648, %v1853_v1 }
  0x68   :  { %3288 = vst [vmem:[#allocation25_spill] sm:$0xff] %v3287_v56  ;;  %v3291_v62 = vsel %vm2737_vm15, 4294967295, %v3290_v62  ;;  %1428 = vmatpush.bf16.msk.msrb.mxu0 %vm2737_vm15, %v1820_v22  ;;  %vm3292_vm2 = vcmp.eq.s32.totalorder %v144_v32, %v1867_v14  ;;  %vm3293_vm11 = vcmp.eq.s32.totalorder %v145_v46, %v1867_v14  ;;  %v3294_v18 = vmov 0  ;;  %v1694_v46 = vld [vmem:[#allocation7 + $0x34] sm:$0xf0] }
  0x69   :  { %vm2752_vm13 = vmpackc.low %vm3293_vm11, %vm3292_vm2  ;;  %vm288_vm8 = vcmp.eq.s32.totalorder %v159_v63, %v1867_v14  ;;  %v174_v56 = vadd.s32 896, %v1853_v1  ;;  %v175_v44 = vadd.s32 904, %v1853_v1  ;;  %vm3296_vm2 = vcmp.eq.s32.totalorder %v177_v7, %v1867_v14  ;;  %v1313_v1 = vld [vmem:[#allocation7 + $0x18] sm:$0xf]  ;;  %v3365_v63 = vld [vmem:[#allocation21_spill] sm:$0xff] }
  0x6a   :  { %v3295_v18 = vsel %vm2752_vm13, 4294967295, %v3294_v18  ;;  %1444 = vmatpush.bf16.msk.msrb.mxu1 %vm2752_vm13, %v1820_v22  ;;  %vm2767_vm11 = vmpackc.low %vm3296_vm2, %vm305_vm1  ;;  %vm256_vm10 = vcmp.eq.s32.totalorder %v127_v50, %v1867_v14  ;;  %vm271_vm15 = vcmp.eq.s32.totalorder %v142_v38, %v1867_v14  ;;  %vm272_vm0 = vcmp.eq.s32.totalorder %v143_v19, %v1867_v14  ;;  %v1315_v38 = vld [vmem:[#allocation7 + $0x38] sm:$0xf0]  ;;  %v1529_v19 = vld [vmem:[#allocation5 + $0x50] sm:$0xf] }
  0x6b   :  { %1476 = vmatpush.bf16.msk.msrb.mxu3 %vm2767_vm11, %v1820_v22  ;;  %vm3299_vm13 = vcmp.eq.s32.totalorder %v158_v5, %v1867_v14  ;;  %vm303_vm1 = vcmp.eq.s32.totalorder %v174_v56, %v1867_v14  ;;  %vm304_vm2 = vcmp.eq.s32.totalorder %v175_v44, %v1867_v14  ;;  %vm3302_vm5 = vcmp.eq.s32.totalorder %v126_v12, %v1867_v14  ;;  %v3367_v12 = vld [vmem:[#allocation22_spill] sm:$0xff]  ;;  %v1507_v32 = vld [vmem:[#allocation5 + $0x38] sm:$0xf0]  ;;  %v1537_v5 = vld [vmem:[#allocation5 + $0x58] sm:$0xf] }
  0x6c   :  { %vm2779_vm6 = vmpackc.low %vm288_vm8, %vm3299_vm13  ;;  %v1306_v50 = vor.u32 %v1693_v54, %v1305_v8  ;;  %v1310_v44 = vor.u32 %v1689_v30, %v1307_v29  ;;  %v1314_v56 = vor.u32 %v1694_v46, %v1313_v1  ;;  %v1318_v54 = vor.u32 %v1690_v2, %v1315_v38  ;;  %v3359_v29 = vld [vmem:[#allocation18_spill] sm:$0xff]  ;;  %v3363_v30 = vld [vmem:[#allocation20_spill] sm:$0xff] }
  0x6d   :  { %1462 = vmatpush.bf16.msk.msrb.mxu2 %vm2779_vm6, %v1820_v22  ;;  %vm2790_vm7 = vmpackc.low %vm256_vm10, %vm3302_vm5  ;;  %vm3316_vm10 = vnez %v3118_v60  ;;  %vm3317_vm13 = vnez %v3111_v52  ;;  %v1481_v52 = vld [vmem:[#allocation5] sm:$0xf]  ;;  %v1671_v60 = vld [vmem:[#allocation5 + $0x4] sm:$0xf] }
  0x6e   :  { %1430 = vmatpush.bf16.msk.msrb.mxu0 %vm2790_vm7, %v1820_v22  ;;  %vm2797_vm8 = vmpackc.low %vm272_vm0, %vm271_vm15  ;;  %vm3313_vm0 = vnez %v3096_v40  ;;  %vm3315_vm15 = vnez %v3107_v49  ;;  %v1338_v40 = vor.u32 %v1701_v23, %v1337_v21  ;;  %v3369_v8 = vld [vmem:[#allocation23_spill] sm:$0xff]  ;;  %v3371_v1 = vld [vmem:[#allocation24_spill] sm:$0xff] }
  0x6f   :  { %1446 = vmatpush.bf16.msk.msrb.mxu1 %vm2797_vm8, %v1820_v22  ;;  %vm2807_vm5 = vmpackc.low %vm304_vm2, %vm303_vm1  ;;  %vm3318_vm1 = vnez %v3115_v57  ;;  %vm3319_vm2 = vnez %v3122_v61  ;;  %v1675_v57 = vld [vmem:[#allocation5 + $0x1c] sm:$0xf0]  ;;  %v1483_v61 = vld [vmem:[#allocation5 + $0x20] sm:$0xf0] }
  0x70   :  { %1478 = vmatpush.bf16.msk.msrb.mxu3 %vm2807_vm5, %v1820_v22  ;;  %873 = vmatmul.bf16.vlgmr.msrb.gmra.mxu2 %v1314_v56  ;;  %v3373_v46 = vld [vmem:[#allocation25_spill] sm:$0xff]  ;;  %v1497_v2 = vld [vmem:[#allocation5 + $0x10] sm:$0xf]  ;;  %v1678_v56 = vld [vmem:[#allocation5 + $0x34] sm:$0xf0] }
  0x71   :  { %1576 = vmatpush.bf16.msk.msra.mxu2 %vm1901_vm14, %v1820_v22  ;;  %835 = vmatmul.bf16.vlgmr.msrb.gmra.mxu0 %v1306_v50  ;;  %vm3310_vm14 = vnez %v3089_v33  ;;  %v1702_v33 = vld [vmem:[#allocation7 + $0x74] sm:$0xf0]  ;;  %v1677_v38 = vld [vmem:[#allocation5 + $0x2c] sm:$0xf0]  ;;  %v1673_v50 = vld [vmem:[#allocation5 + $0x14] sm:$0xf] }
  0x72   :  { %1544 = vmatpush.bf16.msk.msra.mxu0 %vm1879_vm4, %v1820_v22  ;;  %854 = vmatmul.bf16.vlgmr.msrb.gmra.mxu1 %v1310_v44  ;;  %vm3309_vm4 = vnez %v3087_v28  ;;  %v1345_v28 = vld [vmem:[#allocation7 + $0x58] sm:$0xf]  ;;  %v1498_v7 = vor.u32 %v1677_v38, %v1497_v2 }
  0x73   :  { %1560 = vmatpush.bf16.msk.msra.mxu1 %vm1890_vm9, %v1820_v22  ;;  %892 = vmatmul.bf16.vlgmr.msrb.gmra.mxu3 %v1318_v54  ;;  %vm3311_vm9 = vnez %v3093_v37  ;;  %v1347_v37 = vld [vmem:[#allocation7 + $0x78] sm:$0xf0]  ;;  %v1505_v44 = vld [vmem:[#allocation5 + $0x18] sm:$0xf] }
  0x74   :  { %1592 = vmatpush.bf16.msk.msra.mxu3 %vm1916_vm3, %v1820_v22  ;;  %vm3312_vm3 = vnez %v3103_v48  ;;  %v1346_v48 = vor.u32 %v1702_v33, %v1345_v28  ;;  %v1350_v49 = vor.u32 %v1698_v36, %v1347_v37  ;;  %v1506_v21 = vor.u32 %v1678_v56, %v1505_v44  ;;  %v1531_v28 = vld [vmem:[#allocation5 + $0x70] sm:$0xf0]  ;;  %v1686_v33 = vld [vmem:[#allocation5 + $0x74] sm:$0xf0]  ;;  %v1682_v36 = vld [vmem:[#allocation5 + $0x5c] sm:$0xf] }
  0x75   :  { %1578 = vmatpush.bf16.msk.msra.mxu2 %vm1961_vm12, %v1820_v22  ;;  %vm3314_vm12 = vnez %v3100_v45  ;;  %v1342_v45 = vor.u32 %v1697_v24, %v1339_v25  ;;  %v1685_v24 = vld [vmem:[#allocation5 + $0x6c] sm:$0xf0]  ;;  %v1681_v25 = vld [vmem:[#allocation5 + $0x54] sm:$0xf]  ;;  %v1539_v37 = vld [vmem:[#allocation5 + $0x78] sm:$0xf0] }
  0x76   :  { %1546 = vmatpush.bf16.msk.msra.mxu0 %vm3309_vm4, %v1820_v22  ;;  %vm3320_vm4 = vnez %v3133_v9  ;;  %v1672_v9 = vld [vmem:[#allocation5 + $0xc] sm:$0xf]  ;;  %v1530_v14 = vor.u32 %v1685_v24, %v1529_v19 }
  0x77   :  { %1562 = vmatpush.bf16.msk.msra.mxu1 %vm3310_vm14, %v1820_v22  ;;  %vm3321_vm14 = vnez %v3126_v0  ;;  %v1489_v0 = vld [vmem:[#allocation5 + $0x8] sm:$0xf] }
  0x78   :  { %1594 = vmatpush.bf16.msk.msra.mxu3 %vm3311_vm9, %v1820_v22  ;;  %vm3322_vm9 = vnez %v3130_v6  ;;  %v1676_v6 = vld [vmem:[#allocation5 + $0x24] sm:$0xf0] }
  0x79   :  { %1580 = vmatpush.bf16.msk.msra.mxu2 %vm3312_vm3, %v1820_v22  ;;  %vm3323_vm3 = vnez %v3137_v10  ;;  %v1491_v10 = vld [vmem:[#allocation5 + $0x28] sm:$0xf0] }
  0x7a   :  { %1548 = vmatpush.bf16.msk.msra.mxu0 %vm3313_vm0, %v1820_v22  ;;  %vm3324_vm0 = vnez %v3149_v31  ;;  %v1490_v31 = vor.u32 %v1676_v6, %v1489_v0 }
  0x7b   :  { %1564 = vmatpush.bf16.msk.msra.mxu1 %vm3314_vm12, %v1820_v22  ;;  %vm3325_vm12 = vnez %v3141_v15  ;;  %v1482_v15 = vor.u32 %v1675_v57, %v1481_v52 }
  0x7c   :  { %1596 = vmatpush.bf16.msk.msra.mxu3 %vm3315_vm15, %v1820_v22  ;;  %vm3326_vm15 = vnez %v3145_v26  ;;  %v1486_v26 = vor.u32 %v1671_v60, %v1483_v61 }
  0x7d   :  { %1582 = vmatpush.bf16.msk.msra.mxu2 %vm3316_vm10, %v1820_v22  ;;  %vm3327_vm10 = vnez %v3153_v35  ;;  %v1494_v35 = vor.u32 %v1672_v9, %v1491_v10 }
  0x7e   :  { %1550 = vmatpush.bf16.msk.msra.mxu0 %vm3317_vm13, %v1820_v22  ;;  %vm3328_vm13 = vnez %v3165_v55  ;;  %v3345_v55 = vld [vmem:[#allocation14_spill] sm:$0xff] }
  0x7f   :  { %1566 = vmatpush.bf16.msk.msra.mxu1 %vm3318_vm1, %v1820_v22  ;;  %vm3329_vm1 = vnez %v3157_v43  ;;  %v3341_v43 = vld [vmem:[#allocation12_spill] sm:$0xff] }
  0x80   :  { %1598 = vmatpush.bf16.msk.msra.mxu3 %vm3319_vm2, %v1820_v22  ;;  %878 = vmatmul.bf16.gmra.mxu2 %v1346_v48  ;;  %vm3330_vm2 = vnez %v3161_v53  ;;  %v3343_v53 = vld [vmem:[#allocation13_spill] sm:$0xff] }
  0x81   :  { %1584 = vmatpush.bf16.msk.msra.mxu2 %vm3320_vm4, %v1820_v22  ;;  %840 = vmatmul.bf16.gmra.mxu0 %v1338_v40  ;;  %vm3331_vm4 = vnez %v3169_v58  ;;  %v3349_v58 = vld [vmem:[#allocation15_spill] sm:$0xff]  ;;  %v1538_v40 = vor.u32 %v1686_v33, %v1537_v5 }
  0x82   :  { %1552 = vmatpush.bf16.msk.msra.mxu0 %vm3321_vm14, %v1820_v22  ;;  %859 = vmatmul.bf16.gmra.mxu1 %v1342_v45  ;;  %vm3332_vm14 = vnez %v3181_v13  ;;  %v1679_v13 = vld [vmem:[#allocation5 + $0x44] sm:$0xf]  ;;  %v1542_v45 = vor.u32 %v1682_v36, %v1539_v37 }
  0x83   :  { %1568 = vmatpush.bf16.msk.msra.mxu1 %vm3322_vm9, %v1820_v22  ;;  %897 = vmatmul.bf16.gmra.mxu3 %v1350_v49  ;;  %vm3333_vm9 = vnez %v3173_v3  ;;  %v1513_v3 = vld [vmem:[#allocation5 + $0x40] sm:$0xf] }
  0x84   :  { %1600 = vmatpush.bf16.msk.msra.mxu3 %vm3323_vm3, %v1820_v22  ;;  %vm3334_vm3 = vnez %v3177_v11  ;;  %v1683_v11 = vld [vmem:[#allocation5 + $0x5c] sm:$0xf0] }
  0x85   :  { %1586 = vmatpush.bf16.msk.msra.mxu2 %vm3324_vm0, %v1820_v22  ;;  %vm3335_vm0 = vnez %v3185_v16  ;;  %v1515_v16 = vld [vmem:[#allocation5 + $0x60] sm:$0xf0] }
  0x86   :  { %1554 = vmatpush.bf16.msk.msra.mxu0 %vm3325_vm12, %v1820_v22  ;;  %vm3336_vm12 = vnez %v3189_v20  ;;  %v1521_v20 = vld [vmem:[#allocation5 + $0x48] sm:$0xf] }
  0x87   :  { %1570 = vmatpush.bf16.msk.msra.mxu1 %vm3326_vm15, %v1820_v22  ;;  %vm3337_vm15 = vnez %v3192_v34  ;;  %v1684_v34 = vld [vmem:[#allocation5 + $0x64] sm:$0xf0] }
  0x88   :  { %1602 = vmatpush.bf16.msk.msra.mxu3 %vm3327_vm10, %v1820_v22  ;;  %vm3338_vm10 = vnez %v3196_v39  ;;  %v3355_v39 = vld [vmem:[#allocation16_spill] sm:$0xff] }
  0x89   :  { %1588 = vmatpush.bf16.msk.msra.mxu2 %vm3328_vm13, %v1820_v22  ;;  %vm3339_vm13 = vnez %v3200_v42  ;;  %v1680_v42 = vld [vmem:[#allocation5 + $0x4c] sm:$0xf] }
  0x8a   :  { %1556 = vmatpush.bf16.msk.msra.mxu0 %vm3329_vm1, %v1820_v22  ;;  %vm3340_vm1 = vnez %v3204_v47  ;;  %v1523_v47 = vld [vmem:[#allocation5 + $0x68] sm:$0xf0] }
  0x8b   :  { %1572 = vmatpush.bf16.msk.msra.mxu1 %vm3330_vm2, %v1820_v22  ;;  %vm3342_vm2 = vnez %v3341_v43 }
  0x8c   :  { %1604 = vmatpush.bf16.msk.msra.mxu3 %vm3331_vm4, %v1820_v22  ;;  %vm3344_vm4 = vnez %v3343_v53 }
  0x8d   :  { %1590 = vmatpush.bf16.msk.msra.mxu2 %vm3332_vm14, %v1820_v22  ;;  %vm3346_vm14 = vnez %v3345_v55 }
  0x8e   :  { %1558 = vmatpush.bf16.msk.msra.mxu0 %vm3333_vm9, %v1820_v22  ;;  %vm3347_vm9 = vnez %v3223_v27  ;;  %v1514_v27 = vor.u32 %v1683_v11, %v1513_v3 }
  0x8f   :  { %1574 = vmatpush.bf16.msk.msra.mxu1 %vm3334_vm3, %v1820_v22  ;;  %vm3348_vm3 = vnez %v3227_v41  ;;  %v3357_v41 = vld [vmem:[#allocation17_spill] sm:$0xff] }
  0x90   :  { %1606 = vmatpush.bf16.msk.msra.mxu3 %vm3335_vm0, %v1820_v22  ;;  %1029 = vmatmul.bf16.vlgmr.msra.gmra.mxu2 %v1490_v31  ;;  %vm3350_vm0 = vnez %v3349_v58 }
  0x91   :  { %1640 = vmatpush.bf16.msk.msrb.mxu2 %vm3336_vm12, %v1820_v22  ;;  %991 = vmatmul.bf16.vlgmr.msra.gmra.mxu0 %v1482_v15  ;;  %vm3351_vm12 = vnez %v3236_v51  ;;  %v1518_v51 = vor.u32 %v1679_v13, %v1515_v16 }
  0x92   :  { %1608 = vmatpush.bf16.msk.msrb.mxu0 %vm3337_vm15, %v1820_v22  ;;  %1010 = vmatmul.bf16.vlgmr.msra.gmra.mxu1 %v1486_v26  ;;  %vm3352_vm15 = vnez %v3240_v59  ;;  %v1522_v59 = vor.u32 %v1684_v34, %v1521_v20 }
  0x93   :  { %1624 = vmatpush.bf16.msk.msrb.mxu1 %vm3338_vm10, %v1820_v22  ;;  %1048 = vmatmul.bf16.vlgmr.msra.gmra.mxu3 %v1494_v35  ;;  %vm3353_vm10 = vnez %v3244_v4  ;;  %v1526_v4 = vor.u32 %v1680_v42, %v1523_v47 }
  0x94   :  { %1656 = vmatpush.bf16.msk.msrb.mxu3 %vm3339_vm13, %v1820_v22  ;;  %vm3354_vm13 = vnez %v3248_v17  ;;  %v3361_v17 = vld [vmem:[#allocation19_spill] sm:$0xff] }
  0x95   :  { %1642 = vmatpush.bf16.msk.msrb.mxu2 %vm3340_vm1, %v1820_v22  ;;  %vm3356_vm1 = vnez %v3355_v39 }
  0x96   :  { %1610 = vmatpush.bf16.msk.msrb.mxu0 %vm3342_vm2, %v1820_v22  ;;  %vm3358_vm2 = vnez %v3357_v41 }
  0x97   :  { %1626 = vmatpush.bf16.msk.msrb.mxu1 %vm3344_vm4, %v1820_v22  ;;  %vm3360_vm4 = vnez %v3359_v29 }
  0x98   :  { %1658 = vmatpush.bf16.msk.msrb.mxu3 %vm3346_vm14, %v1820_v22  ;;  %vm3362_vm14 = vnez %v3361_v17 }
  0x99   :  { %1644 = vmatpush.bf16.msk.msrb.mxu2 %vm3347_vm9, %v1820_v22  ;;  %vm3364_vm9 = vnez %v3363_v30 }
  0x9a   :  { %1612 = vmatpush.bf16.msk.msrb.mxu0 %vm3348_vm3, %v1820_v22  ;;  %vm3366_vm3 = vnez %v3365_v63 }
  0x9b   :  { %1628 = vmatpush.bf16.msk.msrb.mxu1 %vm3350_vm0, %v1820_v22  ;;  %vm3368_vm0 = vnez %v3367_v12 }
  0x9c   :  { %1660 = vmatpush.bf16.msk.msrb.mxu3 %vm3351_vm12, %v1820_v22  ;;  %vm3370_vm12 = vnez %v3369_v8 }
  0x9d   :  { %1646 = vmatpush.bf16.msk.msrb.mxu2 %vm3352_vm15, %v1820_v22  ;;  %vm3372_vm15 = vnez %v3371_v1 }
  0x9e   :  { %1614 = vmatpush.bf16.msk.msrb.mxu0 %vm3353_vm10, %v1820_v22  ;;  %vm3374_vm10 = vnez %v3373_v46 }
  0x9f   :  { %1630 = vmatpush.bf16.msk.msrb.mxu1 %vm3354_vm13, %v1820_v22  ;;  %vm3375_vm13 = vnez %v3291_v62  ;;  %v1499_v62 = vld [vmem:[#allocation5 + $0x30] sm:$0xf0] }
  0xa0   :  { %1662 = vmatpush.bf16.msk.msrb.mxu3 %vm3356_vm1, %v1820_v22  ;;  %1034 = vmatmul.bf16.gmra.mxu2 %v1522_v59  ;;  %vm3376_vm1 = vnez %v3295_v18  ;;  %v1674_v18 = vld [vmem:[#allocation5 + $0x1c] sm:$0xf]  ;;  %v1502_v54 = vor.u32 %v1673_v50, %v1499_v62 }
  0xa1   :  { %1648 = vmatpush.bf16.msk.msrb.mxu2 %vm3358_vm2, %v1820_v22  ;;  %996 = vmatmul.bf16.gmra.mxu0 %v1514_v27  ;;  %v1510_v23 = vor.u32 %v1674_v18, %v1507_v32 }
  0xa2   :  { %1616 = vmatpush.bf16.msk.msrb.mxu0 %vm3360_vm4, %v1820_v22  ;;  %1015 = vmatmul.bf16.gmra.mxu1 %v1518_v51 }
  0xa3   :  { %1632 = vmatpush.bf16.msk.msrb.mxu1 %vm3362_vm14, %v1820_v22  ;;  %1053 = vmatmul.bf16.gmra.mxu3 %v1526_v4 }
  0xa4   :  { %1664 = vmatpush.bf16.msk.msrb.mxu3 %vm3364_vm9, %v1820_v22 }
  0xa5   :  { %1650 = vmatpush.bf16.msk.msrb.mxu2 %vm3366_vm3, %v1820_v22 }
  0xa6   :  { %1618 = vmatpush.bf16.msk.msrb.mxu0 %vm3368_vm0, %v1820_v22 }
  0xa7   :  { %1634 = vmatpush.bf16.msk.msrb.mxu1 %vm3370_vm12, %v1820_v22 }
  0xa8   :  { %1666 = vmatpush.bf16.msk.msrb.mxu3 %vm3372_vm15, %v1820_v22 }
  0xa9   :  { %1652 = vmatpush.bf16.msk.msrb.mxu2 %vm3374_vm10, %v1820_v22 }
  0xaa   :  { %1620 = vmatpush.bf16.msk.msrb.mxu0 %vm3375_vm13, %v1820_v22 }
  0xab   :  { %1636 = vmatpush.bf16.msk.msrb.mxu1 %vm3376_vm1, %v1820_v22 }
  0xac   :  { %1668 = vmatpush.bf16.msk.msrb.mxu3 %vm2767_vm11, %v1820_v22 }
  0xad   :  { %1654 = vmatpush.bf16.msk.msrb.mxu2 %vm2779_vm6, %v1820_v22 }
  0xae   :  { %1622 = vmatpush.bf16.msk.msrb.mxu0 %vm2790_vm7, %v1820_v22 }
  0xaf   :  { %1638 = vmatpush.bf16.msk.msrb.mxu1 %vm2797_vm8, %v1820_v22 }
  0xb0   :  { %1670 = vmatpush.bf16.msk.msrb.mxu3 %vm2807_vm5, %v1820_v22  ;;  %1105 = vmatmul.bf16.vlgmr.msrb.gmra.mxu2 %v1506_v21  ;;  %v1534_v22 = vor.u32 %v1681_v25, %v1531_v28 }
  0xb1   :  { %1067 = vmatmul.bf16.vlgmr.msrb.gmra.mxu0 %v1498_v7 }
  0xb2   :  { %1086 = vmatmul.bf16.vlgmr.msrb.gmra.mxu1 %v1502_v54 }
  0xb3   :  { %1124 = vmatmul.bf16.vlgmr.msrb.gmra.mxu3 %v1510_v23 }
  0xbc   :  { %v760_v48 = vpop.f32.mrf.mxu0 }
  0xbe   :  { %v779_v49 = vpop.f32.mrf.mxu1 }
  0xbf   :  { %v780_v52 = vadd.f32 %v779_v49, %v760_v48 }
  0xc0   :  { %1110 = vmatmul.bf16.gmra.mxu2 %v1538_v40 }
  0xc1   :  { %1072 = vmatmul.bf16.gmra.mxu0 %v1530_v14 }
  0xc2   :  { %1091 = vmatmul.bf16.gmra.mxu1 %v1534_v22 }
  0xc3   :  { %1129 = vmatmul.bf16.gmra.mxu3 %v1542_v45 }
  0xc4   :  { %v762_v60 = vpop.f32.mrf.mxu0 }
  0xc5   :  { %v798_v57 = vpop.f32.mrf.mxu2 }
  0xc6   :  { %v799_v61 = vadd.f32 %v798_v57, %v780_v52  ;;  %v817_v0 = vpop.f32.mrf.mxu3  ;;  %v781_v6 = vpop.f32.mrf.mxu1 }
  0xc7   :  { %v782_v9 = vadd.f32 %v781_v6, %v762_v60 }
  0xc8   :  { %v818_v10 = vadd.f32 %v817_v0, %v799_v61 }
  0xcd   :  { %v800_v15 = vpop.f32.mrf.mxu2 }
  0xce   :  { %v801_v31 = vadd.f32 %v800_v15, %v782_v9  ;;  %v819_v35 = vpop.f32.mrf.mxu3 }
  0xcf   :  { %v765_v26 = vpop.f32.mrf.mxu0 }
  0xd0   :  { %v784_v43 = vpop.f32.mrf.mxu1  ;;  %v820_v55 = vadd.f32 %v819_v35, %v801_v31 }
  0xd1   :  { %v785_v53 = vadd.f32 %v784_v43, %v765_v26 }
  0xd6   :  { %v803_v58 = vpop.f32.mrf.mxu2 }
  0xd7   :  { %v767_v3 = vpop.f32.mrf.mxu0  ;;  %v804_v11 = vadd.f32 %v803_v58, %v785_v53 }
  0xd8   :  { %v822_v13 = vpop.f32.mrf.mxu3  ;;  %v786_v16 = vpop.f32.mrf.mxu1 }
  0xd9   :  { %v787_v20 = vadd.f32 %v786_v16, %v767_v3  ;;  %v823_v34 = vadd.f32 %v822_v13, %v804_v11 }
  0xde   :  { %v805_v39 = vpop.f32.mrf.mxu2 }
  0xdf   :  { %v806_v42 = vadd.f32 %v805_v39, %v787_v20 }
  0xe0   :  { %v824_v47 = vpop.f32.mrf.mxu3 }
  0xe1   :  { %v825_v51 = vadd.f32 %v824_v47, %v806_v42 }
  0xee   :  { %v836_v27 = vpop.f32.mrf.mxu0 }
  0xef   :  { %v855_v41 = vpop.f32.mrf.mxu1  ;;  %v837_v21 = vadd.f32 %v836_v27, %v818_v10 }
  0xf1   :  { %v856_v23 = vadd.f32 %v855_v41, %v837_v21 }
  0xf3   :  { %v874_v59 = vpop.f32.mrf.mxu2 }
  0xf4   :  { %v875_v24 = vadd.f32 %v874_v59, %v856_v23 }
  0xf6   :  { %v893_v4 = vpop.f32.mrf.mxu3  ;;  %v838_v29 = vpop.f32.mrf.mxu0 }
  0xf7   :  { %v857_v17 = vpop.f32.mrf.mxu1  ;;  %v839_v33 = vadd.f32 %v838_v29, %v820_v55  ;;  %v894_v36 = vadd.f32 %v893_v4, %v875_v24 }
  0xf9   :  { %v858_v37 = vadd.f32 %v857_v17, %v839_v33 }
  0xfb   :  { %v876_v30 = vpop.f32.mrf.mxu2 }
  0xfc   :  { %v877_v40 = vadd.f32 %v876_v30, %v858_v37 }
  0xfe   :  { %v895_v63 = vpop.f32.mrf.mxu3  ;;  %v841_v12 = vpop.f32.mrf.mxu0 }
  0xff   :  { %v860_v8 = vpop.f32.mrf.mxu1  ;;  %v842_v52 = vadd.f32 %v841_v12, %v823_v34  ;;  %v896_v60 = vadd.f32 %v895_v63, %v877_v40 }
 0x101   :  { %v861_v0 = vadd.f32 %v860_v8, %v842_v52 }
 0x103   :  { %v879_v1 = vpop.f32.mrf.mxu2 }
 0x104   :  { %v880_v10 = vadd.f32 %v879_v1, %v861_v0 }
 0x106   :  { %v898_v46 = vpop.f32.mrf.mxu3  ;;  %v843_v2 = vpop.f32.mrf.mxu0 }
 0x107   :  { %v862_v38 = vpop.f32.mrf.mxu1  ;;  %v844_v43 = vadd.f32 %v843_v2, %v825_v51  ;;  %v899_v58 = vadd.f32 %v898_v46, %v880_v10 }
 0x109   :  { %v863_v11 = vadd.f32 %v862_v38, %v844_v43 }
 0x10b   :  { %v881_v50 = vpop.f32.mrf.mxu2 }
 0x10c   :  { %v882_v34 = vadd.f32 %v881_v50, %v863_v11 }
 0x10e   :  { %v900_v62 = vpop.f32.mrf.mxu3  ;;  %v992_v44 = vpop.f32.mrf.mxu0 }
 0x10f   :  { %v1011_v56 = vpop.f32.mrf.mxu1  ;;  %v993_v14 = vadd.f32 %v992_v44, %v894_v36  ;;  %v901_v17 = vadd.f32 %v900_v62, %v882_v34 }
 0x111   :  { %v1012_v57 = vadd.f32 %v1011_v56, %v993_v14 }
 0x113   :  { %v1030_v18 = vpop.f32.mrf.mxu2 }
 0x114   :  { %v1031_v61 = vadd.f32 %v1030_v18, %v1012_v57 }
 0x116   :  { %v1049_v32 = vpop.f32.mrf.mxu3  ;;  %v994_v7 = vpop.f32.mrf.mxu0 }
 0x117   :  { %v1013_v54 = vpop.f32.mrf.mxu1  ;;  %v995_v6 = vadd.f32 %v994_v7, %v896_v60  ;;  %v1050_v15 = vadd.f32 %v1049_v32, %v1031_v61 }
 0x119   :  { %v1014_v53 = vadd.f32 %v1013_v54, %v995_v6 }
 0x11b   :  { %v1032_v19 = vpop.f32.mrf.mxu2 }
 0x11c   :  { %v1033_v3 = vadd.f32 %v1032_v19, %v1014_v53 }
 0x11e   :  { %v1051_v25 = vpop.f32.mrf.mxu3  ;;  %v997_v28 = vpop.f32.mrf.mxu0 }
 0x11f   :  { %v1016_v5 = vpop.f32.mrf.mxu1  ;;  %v998_v13 = vadd.f32 %v997_v28, %v899_v58  ;;  %v1052_v39 = vadd.f32 %v1051_v25, %v1033_v3 }
 0x121   :  { %v1017_v59 = vadd.f32 %v1016_v5, %v998_v13 }
 0x123   :  { %v1035_v22 = vpop.f32.mrf.mxu2 }
 0x124   :  { %v1036_v30 = vadd.f32 %v1035_v22, %v1017_v59 }
 0x126   :  { %v1054_v45 = vpop.f32.mrf.mxu3  ;;  %v999_v48 = vpop.f32.mrf.mxu0 }
 0x127   :  { %v1018_v49 = vpop.f32.mrf.mxu1  ;;  %v1000_v51 = vadd.f32 %v999_v48, %v901_v17  ;;  %v1055_v8 = vadd.f32 %v1054_v45, %v1036_v30 }
 0x129   :  { %v1019_v38 = vadd.f32 %v1018_v49, %v1000_v51 }
 0x12b   :  { %v1037_v9 = vpop.f32.mrf.mxu2 }
 0x12c   :  { %v1038_v18 = vadd.f32 %v1037_v9, %v1019_v38 }
 0x12e   :  { %v1056_v26 = vpop.f32.mrf.mxu3  ;;  %v1068_v31 = vpop.f32.mrf.mxu0 }
 0x12f   :  { %v1087_v35 = vpop.f32.mrf.mxu1  ;;  %v1069_v55 = vadd.f32 %v1068_v31, %v1050_v15  ;;  %v1057_v54 = vadd.f32 %v1056_v26, %v1038_v18 }
 0x131   :  { %v1088_v16 = vadd.f32 %v1087_v35, %v1069_v55 }
 0x133   :  { %v1106_v20 = vpop.f32.mrf.mxu2 }
 0x134   :  { %v1107_v42 = vadd.f32 %v1106_v20, %v1088_v16 }
 0x136   :  { %v1125_v47 = vpop.f32.mrf.mxu3  ;;  %v1070_v27 = vpop.f32.mrf.mxu0 }
 0x137   :  { %v1089_v41 = vpop.f32.mrf.mxu1  ;;  %v1126_v4 = vadd.f32 %v1125_v47, %v1107_v42  ;;  %v1071_v29 = vadd.f32 %v1070_v27, %v1052_v39 }
 0x139   :  { %1135 = vst [vmem:[#allocation8] sm:$0xff] %v1126_v4  ;;  %v1090_v63 = vadd.f32 %v1089_v41, %v1071_v29 }
 0x13b   :  { %v1108_v12 = vpop.f32.mrf.mxu2 }
 0x13c   :  { %v1109_v1 = vadd.f32 %v1108_v12, %v1090_v63 }
 0x13e   :  { %v1127_v46 = vpop.f32.mrf.mxu3  ;;  %v1073_v2 = vpop.f32.mrf.mxu0 }
 0x13f   :  { %v1128_v50 = vadd.f32 %v1127_v46, %v1109_v1  ;;  %v1074_v44 = vadd.f32 %v1073_v2, %v1055_v8  ;;  %v1092_v56 = vpop.f32.mrf.mxu1 }
 0x141   :  { %1136 = vst [vmem:[#allocation8 + $0x8] sm:$0xff] %v1128_v50  ;;  %v1093_v32 = vadd.f32 %v1092_v56, %v1074_v44 }
 0x143   :  { %v1111_v7 = vpop.f32.mrf.mxu2 }
 0x144   :  { %v1112_v21 = vadd.f32 %v1111_v7, %v1093_v32 }
 0x146   :  { %v1130_v62 = vpop.f32.mrf.mxu3  ;;  %v1075_v23 = vpop.f32.mrf.mxu0 }
 0x147   :  { %v1131_v19 = vadd.f32 %v1130_v62, %v1112_v21  ;;  %v1076_v24 = vadd.f32 %v1075_v23, %v1057_v54  ;;  %v1094_v25 = vpop.f32.mrf.mxu1 }
 0x149   :  { %1137 = vst [vmem:[#allocation8 + $0x10] sm:$0xff] %v1131_v19  ;;  %v1095_v28 = vadd.f32 %v1094_v25, %v1076_v24 }
 0x14b   :  { %v1113_v5 = vpop.f32.mrf.mxu2 }
 0x14c   :  { %v1114_v33 = vadd.f32 %v1113_v5, %v1095_v28 }
 0x14e   :  { %v1132_v36 = vpop.f32.mrf.mxu3 }
 0x14f   :  { %v1133_v37 = vadd.f32 %v1132_v36, %v1114_v33 }
 0x151   :  { %1138 = vst [vmem:[#allocation8 + $0x18] sm:$0xff] %v1133_v37 }
 0x152   :  { %1151 = dma.vmem_to_hbm [thread:$0]  %s1144_s2, 512, %s1146_s30, [#allocation4], %s1822_s4, %s1822_s4, %s1823_s5  }
 0x153   :  { %1813 = dma.done.wait [#allocation4], 512  }
 0x154   :  { %1814 = vsyncadd [#allocation4], 4294966784 }
 0x155   :  { %1156 = vsyncpa [#allocation3], 1 }
 0x156   :  { %1157 = vsyncpa [#allocation6], 1 }
 0x157   :  { %1158 = vsyncpa [#allocation4], 1 }

</bundles_post_ra>
